<compile_context>
chip_gen: v5e
topology: v5e:2x2
jax: 0.10.0
libtpu: 0.0.40
codegen_flags: <defaults>
</compile_context>

<pallas_src>
import functools

import jax
import jax.numpy as jnp
from jax.experimental import pallas as pl
from jax.experimental.pallas import tpu as pltpu


def _round_up(x, m):
    return ((x + m - 1) // m) * m


def _pick_tiles(n):
    """Tile sizes for the (dst, src) grid, derived from the (static) node count.

    tile_k (src / reduction axis) is made as large as possible (<= 1024) to cut
    grid-step overhead and h re-read traffic; tile_m is capped so that there are
    >= 2 destination tiles whenever N > 128 (v7x has 2 TensorCores sharding the
    "parallel" dst axis; a single dst tile would idle one of them).
    """
    n128 = _round_up(n, 128)
    tile_k = min(1024, n128)
    tile_m = min(512, n128)
    if n128 > 128:
        tile_m = min(tile_m, _round_up(n128 // 2, 128))
    return tile_m, tile_k


def prepare_graph(adj):
    """Graph-static preprocessing, done once per graph (not per layer/forward).

    adj : (N, N) float 0/1 dense adjacency, adj[v, u] = 1 iff edge u -> v.
          NOTE: int8 storage is exact only for an unweighted 0/1 adjacency.
    Returns (adj_int8_padded, inv_deg_padded, tile_m, tile_k).
    """
    n = adj.shape[0]
    tile_m, tile_k = _pick_tiles(n)
    n_dst = _round_up(n, tile_m)
    n_src = _round_up(n, tile_k)

    deg = jnp.sum(adj, axis=1, keepdims=True)                      # in-degree
    inv_deg = jnp.where(deg > 0, 1.0 / jnp.maximum(deg, 1.0), 0.0).astype(jnp.float32)

    adj_i8 = jnp.pad(adj.astype(jnp.int8), ((0, n_dst - n), (0, n_src - n)))
    inv_deg_p = jnp.pad(inv_deg, ((0, n_dst - n), (0, 0)))
    return adj_i8, inv_deg_p, tile_m, tile_k


def _sage_conv_kernel(adj_ref, h_self_ref, h_src_ref, inv_deg_ref,
                      w_self_ref, w_neigh_ref, b_ref, out_ref,
                      acc_ref, *, apply_relu):
    """One (dst-tile, src-tile) grid step.

    adj_ref    : (TM, TK)   int8 adjacency tile (dst x src)
    h_self_ref : (TM, F)    f32 features of this destination tile
    h_src_ref  : (TK, F)    f32 features of this source tile
    inv_deg_ref: (TM, 1)    f32 1/in_degree (0 where in_degree == 0)
    w_self_ref : (F, Opad)  f32  == W.T[:F]  (zero-padded to lane-dense O)
    w_neigh_ref: (F, Opad)  f32  == W.T[F:]
    b_ref      : (1, Opad)  f32
    out_ref    : (TM, Opad)
    acc_ref    : (TM, F)    f32 scratch: neighbor feature sums
    """
    k = pl.program_id(1)

    @pl.when(k == 0)
    def _init():
        acc_ref[...] = jnp.zeros_like(acc_ref)

    # int8 {0,1} -> f32 is exact; neighbor-sum accumulation on the MXU.
    adj = adj_ref[...].astype(jnp.float32)
    acc_ref[...] += jnp.dot(adj, h_src_ref[...],
                            preferred_element_type=jnp.float32)

    @pl.when(k == pl.num_programs(1) - 1)
    def _finalize():
        h_n = acc_ref[...] * inv_deg_ref[...]     # mean; exactly 0 where deg == 0
        out = (jnp.dot(h_self_ref[...], w_self_ref[...],
                       preferred_element_type=jnp.float32)
               + jnp.dot(h_n, w_neigh_ref[...],
                         preferred_element_type=jnp.float32)
               + b_ref[...])
        if apply_relu:
            out = jnp.maximum(out, 0.0)
        out_ref[...] = out.astype(out_ref.dtype)


def sage_conv(adj_i8, inv_deg, h, weight, bias, *, apply_relu, tile_m, tile_k):
    """One SAGEConv layer.

    adj_i8  : (Ndst, Nsrc) int8 padded dense adjacency (graph-static, prepared once)
    inv_deg : (Ndst, 1)    f32 padded 1/in_degree (0 where in_degree == 0)
    h       : (N, F)       f32 node features
    weight  : (O, 2F) f32 (PyTorch nn.Linear layout), bias: (O,)
    """
    n, f = h.shape
    o = weight.shape[0]
    assert weight.shape[1] == 2 * f
    n_dst, n_src = adj_i8.shape
    o_pad = _round_up(o, 128)            # lane-dense output stores

    # One padded copy of h serves both the dst-row (self) and src-row streams.
    n_max = max(n_dst, n_src)
    h_p = jnp.pad(h.astype(jnp.float32), ((0, n_max - n), (0, 0)))

    w_t = weight.T.astype(jnp.float32)   # (2F, O)
    w_self = jnp.pad(w_t[:f], ((0, 0), (0, o_pad - o)))
    w_neigh = jnp.pad(w_t[f:], ((0, 0), (0, o_pad - o)))
    b2d = jnp.pad(bias.reshape(1, o).astype(jnp.float32),
                  ((0, 0), (0, o_pad - o)))

    grid = (n_dst // tile_m, n_src // tile_k)    # reduction (src) axis last
    out = pl.pallas_call(
        functools.partial(_sage_conv_kernel, apply_relu=apply_relu),
        out_shape=jax.ShapeDtypeStruct((n_dst, o_pad), jnp.float32),
        grid_spec=pltpu.PrefetchScalarGridSpec(
            num_scalar_prefetch=0,
            grid=grid,
            in_specs=[
                pl.BlockSpec((tile_m, tile_k), lambda i, k: (i, k)),   # adj (int8)
                pl.BlockSpec((tile_m, f),      lambda i, k: (i, 0)),   # h (self rows)
                pl.BlockSpec((tile_k, f),      lambda i, k: (k, 0)),   # h (src rows)
                pl.BlockSpec((tile_m, 1),      lambda i, k: (i, 0)),   # 1/deg
                pl.BlockSpec((f, o_pad),       lambda i, k: (0, 0)),   # W_self
                pl.BlockSpec((f, o_pad),       lambda i, k: (0, 0)),   # W_neigh
                pl.BlockSpec((1, o_pad),       lambda i, k: (0, 0)),   # bias
            ],
            out_specs=pl.BlockSpec((tile_m, o_pad), lambda i, k: (i, 0)),
            scratch_shapes=[pltpu.VMEM((tile_m, f), jnp.float32)],
        ),
        compiler_params=pltpu.CompilerParams(
            dimension_semantics=("parallel", "arbitrary")),
    )(adj_i8, h_p, h_p, inv_deg, w_self, w_neigh, b2d)
    return out[:n, :o]


def sage_model(adj, h, w1, b1, w2, b2):
    """Model.forward: conv2(g, relu(conv1(g, h)))."""
    # Graph-static prep (pad + int8 cast + degrees) done once and shared by both
    # layers; tile sizes derive from the static node count.
    adj_i8, inv_deg, tile_m, tile_k = prepare_graph(adj)
    # TODO(synk): for very large N, fuse the two layers into one pallas_call with
    # the int8 adjacency resident in VMEM (manual DMA once) to halve adj traffic.
    h1 = sage_conv(adj_i8, inv_deg, h, w1, b1, apply_relu=True,
                   tile_m=tile_m, tile_k=tile_k)
    h2 = sage_conv(adj_i8, inv_deg, h1, w2, b2, apply_relu=False,
                   tile_m=tile_m, tile_k=tile_k)
    return h2


# ------------------------------------------------------------------ reference
def _sage_conv_ref(adj, h, weight, bias):
    deg = adj.sum(axis=1, keepdims=True)
    h_n = jnp.where(deg > 0, (adj @ h) / jnp.maximum(deg, 1.0), 0.0)
    return jnp.concatenate([h, h_n], axis=1) @ weight.T + bias


def _model_ref(adj, h, w1, b1, w2, b2):
    h1 = jax.nn.relu(_sage_conv_ref(adj, h, w1, b1))
    return _sage_conv_ref(adj, h1, w2, b2)


if __name__ == "__main__":
    # TODO(synk): dgl.data.CoraGraphDataset / DGLGraph message passing have no
    # Pallas equivalent; a deterministic synthetic dense adjacency stands in.
    N = 256
    IN_FEATS = 32
    HIDDEN = 32
    OUT_FEATS = 16

    key = jax.random.PRNGKey(0)
    k_adj, k_h, k_w1, k_b1, k_w2, k_b2 = jax.random.split(key, 6)

    # Random sparse directed graph (~3% density), no self-loops, and node 0
    # with no in-edges (exercises the mean-over-empty-neighborhood case).
    adj = (jax.random.uniform(k_adj, (N, N)) < 0.03).astype(jnp.float32)
    adj = adj * (1.0 - jnp.eye(N, dtype=jnp.float32))
    adj = adj.at[0, :].set(0.0)

    h = jax.random.normal(k_h, (N, IN_FEATS), dtype=jnp.float32)

    bound1 = 1.0 / jnp.sqrt(2.0 * IN_FEATS)
    w1 = jax.random.uniform(k_w1, (HIDDEN, 2 * IN_FEATS),
                            minval=-bound1, maxval=bound1, dtype=jnp.float32)
    b1 = jax.random.uniform(k_b1, (HIDDEN,),
                            minval=-bound1, maxval=bound1, dtype=jnp.float32)
    bound2 = 1.0 / jnp.sqrt(2.0 * HIDDEN)
    w2 = jax.random.uniform(k_w2, (OUT_FEATS, 2 * HIDDEN),
                            minval=-bound2, maxval=bound2, dtype=jnp.float32)
    b2 = jax.random.uniform(k_b2, (OUT_FEATS,),
                            minval=-bound2, maxval=bound2, dtype=jnp.float32)

    fwd = jax.jit(sage_model)
    out = jax.block_until_ready(fwd(adj, h, w1, b1, w2, b2))

    ref = _model_ref(adj, h, w1, b1, w2, b2)
    assert out.shape == (N, OUT_FEATS)
    max_err = float(jnp.max(jnp.abs(out - ref)))
    assert jnp.allclose(out, ref, atol=1e-3, rtol=1e-3), f"mismatch vs ref: {max_err}"

    print("KERNEL_OK")
</pallas_src>

<mosaic_0001>
module attributes {stable_mosaic.version = 11 : i64} {
  func.func @_sage_conv_kernel(%arg0: i32, %arg1: i32, %arg2: memref<128x256xi8, #tpu.memory_space<vmem>>, %arg3: memref<128x32xf32, #tpu.memory_space<vmem>>, %arg4: memref<256x32xf32, #tpu.memory_space<vmem>>, %arg5: memref<128x1xf32, #tpu.memory_space<vmem>>, %arg6: memref<32x128xf32, #tpu.memory_space<vmem>>, %arg7: memref<32x128xf32, #tpu.memory_space<vmem>>, %arg8: memref<1x128xf32, #tpu.memory_space<vmem>>, %arg9: memref<128x128xf32, #tpu.memory_space<vmem>>, %arg10: memref<128x32xf32, #tpu.memory_space<vmem>>) attributes {dimension_semantics = [#tpu.dimension_semantics<parallel>, #tpu.dimension_semantics<arbitrary>], iteration_bounds = array<i64: 2, 1>, scalar_prefetch = 0 : i64, scratch_operands = 1 : i64, tpu.core_type = #tpu.core_type<tc>, window_params = [{transform_indices = @transform_0, window_bounds = array<i64: 128, 256>}, {transform_indices = @transform_1, window_bounds = array<i64: 128, 32>}, {transform_indices = @transform_2, window_bounds = array<i64: 256, 32>}, {transform_indices = @transform_3, window_bounds = array<i64: 128, 1>}, {pipeline_mode = #tpu.pipeline_mode<synchronous>, transform_indices = @transform_4, window_bounds = array<i64: 32, 128>}, {pipeline_mode = #tpu.pipeline_mode<synchronous>, transform_indices = @transform_5, window_bounds = array<i64: 32, 128>}, {pipeline_mode = #tpu.pipeline_mode<synchronous>, transform_indices = @transform_6, window_bounds = array<i64: 1, 128>}, {transform_indices = @transform_7, window_bounds = array<i64: 128, 128>}]} {
    %c0_i32 = arith.constant 0 : i32
    %0 = arith.cmpi eq, %arg1, %c0_i32 : i32
    %1 = arith.extui %0 : i1 to i32
    %c0_i32_0 = arith.constant 0 : i32
    %2 = arith.cmpi ne, %1, %c0_i32_0 : i32
    scf.if %2 {
      %cst_10 = arith.constant 0.000000e+00 : f32
      %13 = vector.broadcast %cst_10 : f32 to vector<128x32xf32>
      %c0_11 = arith.constant 0 : index
      %c0_12 = arith.constant 0 : index
      %14 = vector.load %arg10[%c0_11, %c0_12] : memref<128x32xf32, #tpu.memory_space<vmem>>, vector<128x32xf32>
      tpu.vector_store %arg10[%c0_11, %c0_12], %13 {strides = array<i32>} : memref<128x32xf32, #tpu.memory_space<vmem>>, vector<128x32xf32>,
    } else {
    }
    %c0 = arith.constant 0 : index
    %c0_1 = arith.constant 0 : index
    %3 = vector.load %arg2[%c0, %c0_1] : memref<128x256xi8, #tpu.memory_space<vmem>>, vector<128x256xi8>
    %4 = arith.sitofp %3 : vector<128x256xi8> to vector<128x256xf32>
    %c0_2 = arith.constant 0 : index
    %c0_3 = arith.constant 0 : index
    %5 = vector.load %arg10[%c0_2, %c0_3] : memref<128x32xf32, #tpu.memory_space<vmem>>, vector<128x32xf32>
    %c0_4 = arith.constant 0 : index
    %c0_5 = arith.constant 0 : index
    %6 = vector.load %arg4[%c0_4, %c0_5] : memref<256x32xf32, #tpu.memory_space<vmem>>, vector<256x32xf32>
    %cst = arith.constant dense<0.000000e+00> : vector<128x32xf32>
    %7 = tpu.matmul %4, %6, %cst {dimension_numbers = #tpu.dot_dimension_numbers<[1], [0], [0], [1], [0, 0, 1, 1], [], []>} : vector<128x256xf32>, vector<256x32xf32>, vector<128x32xf32> -> vector<128x32xf32>
    %8 = arith.addf %5, %7 : vector<128x32xf32>
    %c0_6 = arith.constant 0 : index
    %c0_7 = arith.constant 0 : index
    %9 = vector.load %arg10[%c0_6, %c0_7] : memref<128x32xf32, #tpu.memory_space<vmem>>, vector<128x32xf32>
    tpu.vector_store %arg10[%c0_6, %c0_7], %8 {strides = array<i32>} : memref<128x32xf32, #tpu.memory_space<vmem>>, vector<128x32xf32>,
    %c0_i32_8 = arith.constant 0 : i32
    %10 = arith.cmpi eq, %arg1, %c0_i32_8 : i32
    %11 = arith.extui %10 : i1 to i32
    %c0_i32_9 = arith.constant 0 : i32
    %12 = arith.cmpi ne, %11, %c0_i32_9 : i32
    scf.if %12 {
      %c0_10 = arith.constant 0 : index
      %c0_11 = arith.constant 0 : index
      %13 = vector.load %arg10[%c0_10, %c0_11] : memref<128x32xf32, #tpu.memory_space<vmem>>, vector<128x32xf32>
      %c0_12 = arith.constant 0 : index
      %c0_13 = arith.constant 0 : index
      %14 = vector.load %arg5[%c0_12, %c0_13] : memref<128x1xf32, #tpu.memory_space<vmem>>, vector<128x1xf32>
      %15 = vector.broadcast %14 : vector<128x1xf32> to vector<128x32xf32>
      %16 = arith.mulf %13, %15 : vector<128x32xf32>
      %c0_14 = arith.constant 0 : index
      %c0_15 = arith.constant 0 : index
      %17 = vector.load %arg3[%c0_14, %c0_15] : memref<128x32xf32, #tpu.memory_space<vmem>>, vector<128x32xf32>
      %c0_16 = arith.constant 0 : index
      %c0_17 = arith.constant 0 : index
      %18 = vector.load %arg6[%c0_16, %c0_17] : memref<32x128xf32, #tpu.memory_space<vmem>>, vector<32x128xf32>
      %cst_18 = arith.constant dense<0.000000e+00> : vector<128x128xf32>
      %19 = tpu.matmul %17, %18, %cst_18 {dimension_numbers = #tpu.dot_dimension_numbers<[1], [0], [0], [1], [0, 0, 1, 1], [], []>} : vector<128x32xf32>, vector<32x128xf32>, vector<128x128xf32> -> vector<128x128xf32>
      %c0_19 = arith.constant 0 : index
      %c0_20 = arith.constant 0 : index
      %20 = vector.load %arg7[%c0_19, %c0_20] : memref<32x128xf32, #tpu.memory_space<vmem>>, vector<32x128xf32>
      %cst_21 = arith.constant dense<0.000000e+00> : vector<128x128xf32>
      %21 = tpu.matmul %16, %20, %cst_21 {dimension_numbers = #tpu.dot_dimension_numbers<[1], [0], [0], [1], [0, 0, 1, 1], [], []>} : vector<128x32xf32>, vector<32x128xf32>, vector<128x128xf32> -> vector<128x128xf32>
      %22 = arith.addf %19, %21 : vector<128x128xf32>
      %c0_22 = arith.constant 0 : index
      %c0_23 = arith.constant 0 : index
      %23 = vector.load %arg8[%c0_22, %c0_23] : memref<1x128xf32, #tpu.memory_space<vmem>>, vector<1x128xf32>
      %24 = vector.broadcast %23 : vector<1x128xf32> to vector<128x128xf32>
      %25 = arith.addf %22, %24 : vector<128x128xf32>
      %cst_24 = arith.constant 0.000000e+00 : f32
      %26 = vector.broadcast %cst_24 : f32 to vector<128x128xf32>
      %27 = arith.maximumf %25, %26 : vector<128x128xf32>
      %c0_25 = arith.constant 0 : index
      %c0_26 = arith.constant 0 : index
      %28 = vector.load %arg9[%c0_25, %c0_26] : memref<128x128xf32, #tpu.memory_space<vmem>>, vector<128x128xf32>
      tpu.vector_store %arg9[%c0_25, %c0_26], %27 {strides = array<i32>} : memref<128x128xf32, #tpu.memory_space<vmem>>, vector<128x128xf32>,
    } else {
    }
    return
  }
  func.func @transform_0(%arg0: i32, %arg1: i32) -> (i32, i32) {
    %c0_i32 = arith.constant 0 : i32
    return %arg0, %arg1 : i32, i32
  }
  func.func @transform_1(%arg0: i32, %arg1: i32) -> (i32, i32) {
    %c0_i32 = arith.constant 0 : i32
    %c0_i32_0 = arith.constant 0 : i32
    return %arg0, %c0_i32 : i32, i32
  }
  func.func @transform_2(%arg0: i32, %arg1: i32) -> (i32, i32) {
    %c0_i32 = arith.constant 0 : i32
    %c0_i32_0 = arith.constant 0 : i32
    return %arg1, %c0_i32 : i32, i32
  }
  func.func @transform_3(%arg0: i32, %arg1: i32) -> (i32, i32) {
    %c0_i32 = arith.constant 0 : i32
    %c0_i32_0 = arith.constant 0 : i32
    return %arg0, %c0_i32 : i32, i32
  }
  func.func @transform_4(%arg0: i32, %arg1: i32) -> (i32, i32) {
    %c0_i32 = arith.constant 0 : i32
    %c0_i32_0 = arith.constant 0 : i32
    %c0_i32_1 = arith.constant 0 : i32
    return %c0_i32, %c0_i32_0 : i32, i32
  }
  func.func @transform_5(%arg0: i32, %arg1: i32) -> (i32, i32) {
    %c0_i32 = arith.constant 0 : i32
    %c0_i32_0 = arith.constant 0 : i32
    %c0_i32_1 = arith.constant 0 : i32
    return %c0_i32, %c0_i32_0 : i32, i32
  }
  func.func @transform_6(%arg0: i32, %arg1: i32) -> (i32, i32) {
    %c0_i32 = arith.constant 0 : i32
    %c0_i32_0 = arith.constant 0 : i32
    %c0_i32_1 = arith.constant 0 : i32
    return %c0_i32, %c0_i32_0 : i32, i32
  }
  func.func @transform_7(%arg0: i32, %arg1: i32) -> (i32, i32) {
    %c0_i32 = arith.constant 0 : i32
    %c0_i32_0 = arith.constant 0 : i32
    return %arg0, %c0_i32 : i32, i32
  }
}

module attributes {stable_mosaic.version = 11 : i64} {
  func.func @_sage_conv_kernel(%arg0: i32, %arg1: i32, %arg2: memref<128x256xi8, #tpu.memory_space<vmem>>, %arg3: memref<128x32xf32, #tpu.memory_space<vmem>>, %arg4: memref<256x32xf32, #tpu.memory_space<vmem>>, %arg5: memref<128x1xf32, #tpu.memory_space<vmem>>, %arg6: memref<32x128xf32, #tpu.memory_space<vmem>>, %arg7: memref<32x128xf32, #tpu.memory_space<vmem>>, %arg8: memref<1x128xf32, #tpu.memory_space<vmem>>, %arg9: memref<128x128xf32, #tpu.memory_space<vmem>>, %arg10: memref<128x32xf32, #tpu.memory_space<vmem>>) attributes {dimension_semantics = [#tpu.dimension_semantics<parallel>, #tpu.dimension_semantics<arbitrary>], iteration_bounds = array<i64: 2, 1>, scalar_prefetch = 0 : i64, scratch_operands = 1 : i64, tpu.core_type = #tpu.core_type<tc>, window_params = [{transform_indices = @transform_0, window_bounds = array<i64: 128, 256>}, {transform_indices = @transform_1, window_bounds = array<i64: 128, 32>}, {transform_indices = @transform_2, window_bounds = array<i64: 256, 32>}, {transform_indices = @transform_3, window_bounds = array<i64: 128, 1>}, {pipeline_mode = #tpu.pipeline_mode<synchronous>, transform_indices = @transform_4, window_bounds = array<i64: 32, 128>}, {pipeline_mode = #tpu.pipeline_mode<synchronous>, transform_indices = @transform_5, window_bounds = array<i64: 32, 128>}, {pipeline_mode = #tpu.pipeline_mode<synchronous>, transform_indices = @transform_6, window_bounds = array<i64: 1, 128>}, {transform_indices = @transform_7, window_bounds = array<i64: 128, 128>}]} {
    %c0_i32 = arith.constant 0 : i32
    %0 = arith.cmpi eq, %arg1, %c0_i32 : i32
    %1 = arith.extui %0 : i1 to i32
    %c0_i32_0 = arith.constant 0 : i32
    %2 = arith.cmpi ne, %1, %c0_i32_0 : i32
    scf.if %2 {
      %cst_10 = arith.constant 0.000000e+00 : f32
      %13 = vector.broadcast %cst_10 : f32 to vector<128x32xf32>
      %c0_11 = arith.constant 0 : index
      %c0_12 = arith.constant 0 : index
      %14 = vector.load %arg10[%c0_11, %c0_12] : memref<128x32xf32, #tpu.memory_space<vmem>>, vector<128x32xf32>
      tpu.vector_store %arg10[%c0_11, %c0_12], %13 {strides = array<i32>} : memref<128x32xf32, #tpu.memory_space<vmem>>, vector<128x32xf32>,
    } else {
    }
    %c0 = arith.constant 0 : index
    %c0_1 = arith.constant 0 : index
    %3 = vector.load %arg2[%c0, %c0_1] : memref<128x256xi8, #tpu.memory_space<vmem>>, vector<128x256xi8>
    %4 = arith.sitofp %3 : vector<128x256xi8> to vector<128x256xf32>
    %c0_2 = arith.constant 0 : index
    %c0_3 = arith.constant 0 : index
    %5 = vector.load %arg10[%c0_2, %c0_3] : memref<128x32xf32, #tpu.memory_space<vmem>>, vector<128x32xf32>
    %c0_4 = arith.constant 0 : index
    %c0_5 = arith.constant 0 : index
    %6 = vector.load %arg4[%c0_4, %c0_5] : memref<256x32xf32, #tpu.memory_space<vmem>>, vector<256x32xf32>
    %cst = arith.constant dense<0.000000e+00> : vector<128x32xf32>
    %7 = tpu.matmul %4, %6, %cst {dimension_numbers = #tpu.dot_dimension_numbers<[1], [0], [0], [1], [0, 0, 1, 1], [], []>} : vector<128x256xf32>, vector<256x32xf32>, vector<128x32xf32> -> vector<128x32xf32>
    %8 = arith.addf %5, %7 : vector<128x32xf32>
    %c0_6 = arith.constant 0 : index
    %c0_7 = arith.constant 0 : index
    %9 = vector.load %arg10[%c0_6, %c0_7] : memref<128x32xf32, #tpu.memory_space<vmem>>, vector<128x32xf32>
    tpu.vector_store %arg10[%c0_6, %c0_7], %8 {strides = array<i32>} : memref<128x32xf32, #tpu.memory_space<vmem>>, vector<128x32xf32>,
    %c0_i32_8 = arith.constant 0 : i32
    %10 = arith.cmpi eq, %arg1, %c0_i32_8 : i32
    %11 = arith.extui %10 : i1 to i32
    %c0_i32_9 = arith.constant 0 : i32
    %12 = arith.cmpi ne, %11, %c0_i32_9 : i32
    scf.if %12 {
      %c0_10 = arith.constant 0 : index
      %c0_11 = arith.constant 0 : index
      %13 = vector.load %arg10[%c0_10, %c0_11] : memref<128x32xf32, #tpu.memory_space<vmem>>, vector<128x32xf32>
      %c0_12 = arith.constant 0 : index
      %c0_13 = arith.constant 0 : index
      %14 = vector.load %arg5[%c0_12, %c0_13] : memref<128x1xf32, #tpu.memory_space<vmem>>, vector<128x1xf32>
      %15 = vector.broadcast %14 : vector<128x1xf32> to vector<128x32xf32>
      %16 = arith.mulf %13, %15 : vector<128x32xf32>
      %c0_14 = arith.constant 0 : index
      %c0_15 = arith.constant 0 : index
      %17 = vector.load %arg3[%c0_14, %c0_15] : memref<128x32xf32, #tpu.memory_space<vmem>>, vector<128x32xf32>
      %c0_16 = arith.constant 0 : index
      %c0_17 = arith.constant 0 : index
      %18 = vector.load %arg6[%c0_16, %c0_17] : memref<32x128xf32, #tpu.memory_space<vmem>>, vector<32x128xf32>
      %cst_18 = arith.constant dense<0.000000e+00> : vector<128x128xf32>
      %19 = tpu.matmul %17, %18, %cst_18 {dimension_numbers = #tpu.dot_dimension_numbers<[1], [0], [0], [1], [0, 0, 1, 1], [], []>} : vector<128x32xf32>, vector<32x128xf32>, vector<128x128xf32> -> vector<128x128xf32>
      %c0_19 = arith.constant 0 : index
      %c0_20 = arith.constant 0 : index
      %20 = vector.load %arg7[%c0_19, %c0_20] : memref<32x128xf32, #tpu.memory_space<vmem>>, vector<32x128xf32>
      %cst_21 = arith.constant dense<0.000000e+00> : vector<128x128xf32>
      %21 = tpu.matmul %16, %20, %cst_21 {dimension_numbers = #tpu.dot_dimension_numbers<[1], [0], [0], [1], [0, 0, 1, 1], [], []>} : vector<128x32xf32>, vector<32x128xf32>, vector<128x128xf32> -> vector<128x128xf32>
      %22 = arith.addf %19, %21 : vector<128x128xf32>
      %c0_22 = arith.constant 0 : index
      %c0_23 = arith.constant 0 : index
      %23 = vector.load %arg8[%c0_22, %c0_23] : memref<1x128xf32, #tpu.memory_space<vmem>>, vector<1x128xf32>
      %24 = vector.broadcast %23 : vector<1x128xf32> to vector<128x128xf32>
      %25 = arith.addf %22, %24 : vector<128x128xf32>
      %c0_24 = arith.constant 0 : index
      %c0_25 = arith.constant 0 : index
      %26 = vector.load %arg9[%c0_24, %c0_25] : memref<128x128xf32, #tpu.memory_space<vmem>>, vector<128x128xf32>
      tpu.vector_store %arg9[%c0_24, %c0_25], %25 {strides = array<i32>} : memref<128x128xf32, #tpu.memory_space<vmem>>, vector<128x128xf32>,
    } else {
    }
    return
  }
  func.func @transform_0(%arg0: i32, %arg1: i32) -> (i32, i32) {
    %c0_i32 = arith.constant 0 : i32
    return %arg0, %arg1 : i32, i32
  }
  func.func @transform_1(%arg0: i32, %arg1: i32) -> (i32, i32) {
    %c0_i32 = arith.constant 0 : i32
    %c0_i32_0 = arith.constant 0 : i32
    return %arg0, %c0_i32 : i32, i32
  }
  func.func @transform_2(%arg0: i32, %arg1: i32) -> (i32, i32) {
    %c0_i32 = arith.constant 0 : i32
    %c0_i32_0 = arith.constant 0 : i32
    return %arg1, %c0_i32 : i32, i32
  }
  func.func @transform_3(%arg0: i32, %arg1: i32) -> (i32, i32) {
    %c0_i32 = arith.constant 0 : i32
    %c0_i32_0 = arith.constant 0 : i32
    return %arg0, %c0_i32 : i32, i32
  }
  func.func @transform_4(%arg0: i32, %arg1: i32) -> (i32, i32) {
    %c0_i32 = arith.constant 0 : i32
    %c0_i32_0 = arith.constant 0 : i32
    %c0_i32_1 = arith.constant 0 : i32
    return %c0_i32, %c0_i32_0 : i32, i32
  }
  func.func @transform_5(%arg0: i32, %arg1: i32) -> (i32, i32) {
    %c0_i32 = arith.constant 0 : i32
    %c0_i32_0 = arith.constant 0 : i32
    %c0_i32_1 = arith.constant 0 : i32
    return %c0_i32, %c0_i32_0 : i32, i32
  }
  func.func @transform_6(%arg0: i32, %arg1: i32) -> (i32, i32) {
    %c0_i32 = arith.constant 0 : i32
    %c0_i32_0 = arith.constant 0 : i32
    %c0_i32_1 = arith.constant 0 : i32
    return %c0_i32, %c0_i32_0 : i32, i32
  }
  func.func @transform_7(%arg0: i32, %arg1: i32) -> (i32, i32) {
    %c0_i32 = arith.constant 0 : i32
    %c0_i32_0 = arith.constant 0 : i32
    return %arg0, %c0_i32 : i32, i32
  }
}

</mosaic_0001>

<bundles_post_ra>
// kernel: sage_model.3
= control target key start
LH: loop header
LB: loop body
LE: loop exit
PB: predicated region body
PF: predicated region fallthrough
CT: control target
= control target key end

     0   :  { %s1356_s24 = smov 0   ;;  %s1358_s25 = smov 0   ;;  %s1673_s0 = inlined_call_operand.vmem [shape: s8[256,256], index: 0, kind: input, shape index: {}]   ;;  %s1674_s1 = inlined_call_operand.vmem [shape: f32[256,32], index: 1, kind: input, shape index: {}, may-alias: {1,2}]   ;;  %s1675_s2 = inlined_call_operand.vmem [shape: f32[256,32], index: 2, kind: input, shape index: {}, may-alias: {1,2}]   ;;  %s1676_s3 = inlined_call_operand.vmem [shape: f32[256,1], index: 3, kind: input, shape index: {}]   ;;  %s1677_s4 = inlined_call_operand.vmem [shape: f32[32,128], index: 4, kind: input, shape index: {}]   ;;  %s1678_s5 = inlined_call_operand.vmem [shape: f32[32,128], index: 5, kind: input, shape index: {}]   ;;  %s1679_s6 = inlined_call_operand.vmem [shape: f32[1,128], index: 6, kind: input, shape index: {}]   ;;  %s1680_s7 = inlined_call_operand.vmem [shape: f32[256,128], index: 7, kind: output, shape index: {}]  }
   0x1   :  { %s1360_s26 = smov 0  }
   0x2 LB: > { %s29_s27 = sadd.s32 1, %s1308_s25  ;;  %p1215_p0 = scmp.ge.s32.totalorder %s1312_s26, 1  ;;  %s1312_s26 = sphi %s1360_s26, %s17_s26   ;;  %s1308_s25 = sphi %s1358_s25, %s1682_s25   ;;  %s1304_s24 = sphi %s1356_s24, %s1681_s24  }
   0x3   : > { %p31_p1 = scmp.ge.s32.totalorder %s29_s27, 2  ;;  %p291_p2 = scmp.lt.s32.totalorder %s1312_s26, 3 }
   0x5   : > { %s1684_s27 = smov (%p31_p1, %s29_s27), 0  ;;  %p292_p3 = pnand %p1215_p0, %p291_p2 }
   0x6   : > { %s1219_s11 = sshll.u32 (!%p292_p3), %s1304_s24, 4  ;;  %s1216_s22 = sshll.u32 (!%p292_p3), %s1304_s24, 2 }
   0x7   : > { %295 = sbr.rel (%p292_p3) target bundleno = 442 (0x1ba), region = 48  ;;  %p356_p4 = scmp.lt.s32.totalorder (!%p292_p3), %s1219_s11, 31 }
   0x8   : > { %p345_p5 = scmp.lt.s32.totalorder (!%p292_p3), %s1216_s22, 7 }
   0xc   : > { %v503_v0 = vld [vmem:[%s1675_s2 + $0x78] sm:$0xff]  ;;  %v502_v2 = vld [vmem:[%s1675_s2 + $0x70] sm:$0xff]  ;;  %v501_v4 = vld [vmem:[%s1675_s2 + $0x68] sm:$0xff]  ;;  %v1314_v6 = vmov 0   ;;  %s1686_s11 = smov (!%p356_p4, %s1219_s11), 31  ;;  %s1688_s22 = smov (!%p345_p5, %s1216_s22), 7 }
   0xd   : > { %v519_v1 = vld [vmem:[%s1675_s2 + $0xf8] sm:$0xff]  ;;  %520 = vmatpush.msra.mxu0 %v503_v0  ;;  %v518_v3 = vld [vmem:[%s1675_s2 + $0xf0] sm:$0xff]  ;;  %v517_v5 = vld [vmem:[%s1675_s2 + $0xe8] sm:$0xff]  ;;  %1286 = vset.pattern.permute.xlu0 %v1314_v6  ;;  %s1402_s23 = sshll.u32 %s1686_s11, 3  ;;  %s1259_s10 = sshll.u32 %s1688_s22, 4  ;;  %vm383_vm0 = vcmask 261120  }
   0xe   : > { %585 = vmatpush.msra.mxu1 %v519_v1  ;;  %1287 = vset.pattern.permute.xlu1 %v1314_v6  ;;  %v500_v7 = vld [vmem:[%s1675_s2 + $0x60] sm:$0xff]  ;;  %v499_v9 = vld [vmem:[%s1675_s2 + $0x58] sm:$0xff]  ;;  %s1414_s12 = scalar_lea.vmem %s1676_s3, %s1402_s23  ;;  %v498_v12 = vld [vmem:[%s1675_s2 + $0x50] sm:$0xff]  ;;  %s1458_s20 = scalar_lea.vmem %s1673_s0, %s1259_s10 }
   0xf   : > { %521 = vmatpush.msra.mxu0 %v502_v2  ;;  %v516_v8 = vld [vmem:[%s1675_s2 + $0xe0] sm:$0xff]  ;;  %1288 = vset.pattern.permute.xlu2 %v1314_v6  ;;  %v515_v10 = vld [vmem:[%s1675_s2 + $0xd8] sm:$0xff]  ;;  %v514_v13 = vld [vmem:[%s1675_s2 + $0xd0] sm:$0xff]  ;;  %s1549_s22 = scalar_lea.vmem %s1674_s1, %s1402_s23  ;;  %s1630_s9 = scalar_lea.vmem %s1680_s7, %s1402_s23 }
  0x10   : > { %586 = vmatpush.msra.mxu1 %v518_v3  ;;  %v702_v11 = vld [vmem:[%s1414_s12] sm:$0xff]  ;;  %v497_v14 = vld [vmem:[%s1675_s2 + $0x48] sm:$0xff]  ;;  %v704_v18 = vld [vmem:[%s1414_s12 + $0x10] sm:$0xff] }
  0x11   : > { %522 = vmatpush.msra.mxu0 %v501_v4  ;;  %720 = vperm.xlu0 %1286, %v702_v11   ;;  %v513_v15 = vld [vmem:[%s1675_s2 + $0xc8] sm:$0xff]  ;;  %v496_v16 = vld [vmem:[%s1675_s2 + $0x40] sm:$0xff]  ;;  %v495_v20 = vld [vmem:[%s1675_s2 + $0x38] sm:$0xff] }
  0x12   : > { %587 = vmatpush.msra.mxu1 %v517_v5  ;;  %v512_v17 = vld [vmem:[%s1675_s2 + $0xc0] sm:$0xff]  ;;  %v703_v19 = vld [vmem:[%s1414_s12 + $0x8] sm:$0xff]  ;;  %v511_v21 = vld [vmem:[%s1675_s2 + $0xb8] sm:$0xff]  ;;  %730 = vperm.xlu1 %1287, %v704_v18  }
  0x13   : > { %523 = vmatpush.msra.mxu0 %v500_v7  ;;  %v494_v22 = vld [vmem:[%s1675_s2 + $0x30] sm:$0xff]  ;;  %v493_v24 = vld [vmem:[%s1675_s2 + $0x28] sm:$0xff]  ;;  %v705_v26 = vld [vmem:[%s1414_s12 + $0x18] sm:$0xff] }
  0x14   : > { %588 = vmatpush.msra.mxu1 %v516_v8  ;;  %v510_v23 = vld [vmem:[%s1675_s2 + $0xb0] sm:$0xff]  ;;  %v509_v25 = vld [vmem:[%s1675_s2 + $0xa8] sm:$0xff]  ;;  %v492_v27 = vld [vmem:[%s1675_s2 + $0x20] sm:$0xff] }
  0x15   : > { %524 = vmatpush.msra.mxu0 %v499_v9  ;;  %v508_v28 = vld [vmem:[%s1675_s2 + $0xa0] sm:$0xff]  ;;  %v708_v29 = vld [vmem:[%s1414_s12 + $0x30] sm:$0xff]  ;;  %v401_v31 = vld [vmem:[%s1458_s20 + $0x8] sm:$0xff] }
  0x16   : > { %589 = vmatpush.msra.mxu1 %v515_v10  ;;  %v400_v30 = vld [vmem:[%s1458_s20] sm:$0xff]  ;;  %v491_v32 = vld [vmem:[%s1675_s2 + $0x18] sm:$0xff]  ;;  %v490_v34 = vld [vmem:[%s1675_s2 + $0x10] sm:$0xff]  ;;  %v409_v37 = vunpack.c.0.s8 %v401_v31  ;;  %v411_v47 = vunpack.c.1.s8 %v401_v31  ;;  %v413_v53 = vunpack.c.2.s8 %v401_v31  ;;  %v415_v60 = vunpack.c.3.s8 %v401_v31 }
  0x17   : > { %525 = vmatpush.msra.mxu0 %v498_v12  ;;  %v507_v33 = vld [vmem:[%s1675_s2 + $0x98] sm:$0xff]  ;;  %v506_v35 = vld [vmem:[%s1675_s2 + $0x90] sm:$0xff]  ;;  %v408_v36 = vunpack.c.0.s8 %v400_v30  ;;  %v489_v38 = vld [vmem:[%s1675_s2 + $0x8] sm:$0xff]  ;;  %v410_v46 = vunpack.c.1.s8 %v400_v30  ;;  %v412_v52 = vunpack.c.2.s8 %v400_v30  ;;  %v414_v59 = vunpack.c.3.s8 %v400_v30 }
  0x18   : > { %590 = vmatpush.msra.mxu1 %v514_v13  ;;  %v505_v39 = vld [vmem:[%s1675_s2 + $0x88] sm:$0xff]  ;;  %v709_v40 = vld [vmem:[%s1414_s12 + $0x38] sm:$0xff]  ;;  %v488_v41 = vld [vmem:[%s1675_s2] sm:$0xff]  ;;  %v441_v44 = vcvt.s32.f32 %v409_v37  ;;  %v443_v50 = vcvt.s32.f32 %v411_v47  ;;  %v445_v57 = vcvt.s32.f32 %v413_v53  ;;  %v447_v63 = vcvt.s32.f32 %v415_v60 }
  0x19   : > { %526 = vmatpush.msra.mxu0 %v497_v14  ;;  %725 = vperm.xlu0 %1286, %v703_v19   ;;  %v504_v42 = vld [vmem:[%s1675_s2 + $0x80] sm:$0xff]  ;;  %v440_v43 = vcvt.s32.f32 %v408_v36  ;;  %v711_v45 = vld [vmem:[%s1414_s12 + $0x48] sm:$0xff]  ;;  %v712_v48 = vld [vmem:[%s1414_s12 + $0x50] sm:$0xff]  ;;  %v442_v49 = vcvt.s32.f32 %v410_v46  ;;  %v444_v56 = vcvt.s32.f32 %v412_v52  ;;  %v446_v62 = vcvt.s32.f32 %v414_v59 }
  0x1a   : > { %591 = vmatpush.msra.mxu1 %v513_v15  ;;  %735 = vperm.xlu1 %1287, %v705_v26   ;;  %v714_v51 = vld [vmem:[%s1414_s12 + $0x60] sm:$0xff]  ;;  %v715_v55 = vld [vmem:[%s1414_s12 + $0x68] sm:$0xff]  ;;  %v717_v58 = vld [vmem:[%s1414_s12 + $0x78] sm:$0xff] }
  0x1b   : > { %527 = vmatpush.msra.mxu0 %v496_v16  ;;  %v706_v54 = vld [vmem:[%s1414_s12 + $0x20] sm:$0xff]  ;;  %v707_v61 = vld [vmem:[%s1414_s12 + $0x28] sm:$0xff]  ;;  %v402_v0 = vld [vmem:[%s1458_s20 + $0x10] sm:$0xff] }
  0x1c   : > { %592 = vmatpush.msra.mxu1 %v512_v17  ;;  %740 = vperm.xlu2 %1288, %v706_v54   ;;  %v403_v1 = vld [vmem:[%s1458_s20 + $0x18] sm:$0xff]  ;;  %v416_v2 = vunpack.c.0.s8 %v402_v0  ;;  %v710_v4 = vld [vmem:[%s1414_s12 + $0x40] sm:$0xff]  ;;  %v418_v7 = vunpack.c.1.s8 %v402_v0  ;;  %v420_v12 = vunpack.c.2.s8 %v402_v0  ;;  %v716_v14 = vld [vmem:[%s1414_s12 + $0x70] sm:$0xff]  ;;  %v422_v17 = vunpack.c.3.s8 %v402_v0 }
  0x1d   : > { %528 = vmatpush.msra.mxu0 %v495_v20  ;;  %v417_v3 = vunpack.c.0.s8 %v403_v1  ;;  %v419_v8 = vunpack.c.1.s8 %v403_v1  ;;  %v713_v9 = vld [vmem:[%s1414_s12 + $0x58] sm:$0xff]  ;;  %v421_v13 = vunpack.c.2.s8 %v403_v1  ;;  %v423_v18 = vunpack.c.3.s8 %v403_v1  ;;  %v836_v52 = vld [vmem:[%s1678_s5 + $0x10] sm:$0xff]  ;;  %v830_v59 = vld [vmem:[%s1677_s4] sm:$0xff] }
  0x1e   : > { %593 = vmatpush.msra.mxu1 %v511_v21  ;;  %v448_v5 = vcvt.s32.f32 %v416_v2  ;;  %v450_v10 = vcvt.s32.f32 %v418_v7  ;;  %v452_v15 = vcvt.s32.f32 %v420_v12  ;;  %v454_v19 = vcvt.s32.f32 %v422_v17  ;;  %v404_v21 = vld [vmem:[%s1458_s20 + $0x20] sm:$0xff]  ;;  %v832_v53 = vld [vmem:[%s1677_s4 + $0x10] sm:$0xff]  ;;  %v815_v1 = vld [vmem:[%s1549_s22 + $0x8] sm:$0xff] }
  0x1f   : > { %529 = vmatpush.msra.mxu0 %v494_v22  ;;  %v449_v6 = vcvt.s32.f32 %v417_v3  ;;  %v451_v11 = vcvt.s32.f32 %v419_v8  ;;  %v453_v16 = vcvt.s32.f32 %v421_v13  ;;  %v455_v20 = vcvt.s32.f32 %v423_v18  ;;  %v405_v22 = vld [vmem:[%s1458_s20 + $0x28] sm:$0xff]  ;;  %v814_v60 = vld [vmem:[%s1549_s22] sm:$0xff] }
  0x20   : > { %594 = vmatpush.msra.mxu1 %v510_v23  ;;  %v424_v23 = vunpack.c.0.s8 %v404_v21  ;;  %v428_v31 = vunpack.c.2.s8 %v404_v21  ;;  %v431_v36 = vunpack.c.3.s8 %v405_v22 }
  0x21   : > { %530 = vmatpush.msra.mxu0 %v493_v24  ;;  %750 = vperm.xlu0 %1286, %v708_v29   ;;  %v425_v24 = vunpack.c.0.s8 %v405_v22 }
  0x22   : > { %595 = vmatpush.msra.mxu1 %v509_v25  ;;  %755 = vperm.xlu1 %1287, %v709_v40   ;;  %v456_v25 = vcvt.s32.f32 %v424_v23  ;;  %v407_v40 = vld [vmem:[%s1458_s20 + $0x38] sm:$0xff] }
  0x23   : > { %531 = vmatpush.msra.mxu0 %v492_v27  ;;  %v457_v26 = vcvt.s32.f32 %v425_v24  ;;  %v426_v27 = vunpack.c.1.s8 %v404_v21  ;;  %v435_v47 = vunpack.c.1.s8 %v407_v40  ;;  %v439_v0 = vunpack.c.3.s8 %v407_v40 }
  0x24   : > { %596 = vmatpush.msra.mxu1 %v508_v28  ;;  %745 = vperm.xlu2 %1288, %v707_v61   ;;  %v427_v28 = vunpack.c.1.s8 %v405_v22 }
  0x25   : > { %532 = vmatpush.msra.mxu0 %v491_v32  ;;  %v458_v29 = vcvt.s32.f32 %v426_v27  ;;  %v429_v32 = vunpack.c.2.s8 %v405_v22  ;;  %v471_v3 = vcvt.s32.f32 %v439_v0  ;;  %v823_v0 = vld [vmem:[%s1549_s22 + $0x48] sm:$0xff] }
  0x26   : > { %597 = vmatpush.msra.mxu1 %v507_v33  ;;  %v459_v30 = vcvt.s32.f32 %v427_v28  ;;  %v460_v33 = vcvt.s32.f32 %v428_v31  ;;  %v819_v28 = vld [vmem:[%s1549_s22 + $0x28] sm:$0xff] }
  0x27   : > { %533 = vmatpush.msra.mxu0 %v490_v34  ;;  %v461_v34 = vcvt.s32.f32 %v429_v32 }
  0x28   : > { %598 = vmatpush.msra.mxu1 %v506_v35  ;;  %v430_v35 = vunpack.c.3.s8 %v404_v21 }
  0x29   : > { %534 = vmatpush.msra.mxu0 %v489_v38  ;;  %765 = vperm.xlu0 %1286, %v711_v45   ;;  %v463_v38 = vcvt.s32.f32 %v431_v36 }
  0x2a   : > { %599 = vmatpush.msra.mxu1 %v505_v39  ;;  %770 = vperm.xlu1 %1287, %v712_v48   ;;  %v462_v37 = vcvt.s32.f32 %v430_v35  ;;  %v406_v39 = vld [vmem:[%s1458_s20 + $0x30] sm:$0xff] }
  0x2b   : > { %535 = vmatpush.msra.mxu0 %v488_v41  ;;  %v432_v41 = vunpack.c.0.s8 %v406_v39  ;;  %v434_v46 = vunpack.c.1.s8 %v406_v39  ;;  %v436_v54 = vunpack.c.2.s8 %v406_v39 }
  0x2c   : > { %600 = vmatpush.msra.mxu1 %v504_v42  ;;  %536 = vmatmul.f32.vlgmr.msra.gmra.mxu0 %v440_v43  ;;  %v433_v42 = vunpack.c.0.s8 %v407_v40  ;;  %v1315_v43 = vmov 0.0  }
  0x2d   : > { %601 = vmatmul.f32.vlgmr.msra.gmra.mxu1 %v441_v44  ;;  %760 = vperm.xlu2 %1288, %v710_v4   ;;  %384 = vst.msk [vmem:[#allocation2] sm:$0xff] %vm383_vm0, %v1315_v43  ;;  %v464_v44 = vcvt.s32.f32 %v432_v41  ;;  %v466_v48 = vcvt.s32.f32 %v434_v46  ;;  %v468_v61 = vcvt.s32.f32 %v436_v54  ;;  %v816_v4 = vld [vmem:[%s1549_s22 + $0x10] sm:$0xff]  ;;  %v821_v46 = vld [vmem:[%s1549_s22 + $0x38] sm:$0xff] }
  0x2e   : > { %385 = vst.msk [vmem:[#allocation2 + $0x8] sm:$0xff] %vm383_vm0, %v1315_v43  ;;  %v465_v45 = vcvt.s32.f32 %v433_v42 }
  0x2f   : > { %386 = vst.msk [vmem:[#allocation2 + $0x10] sm:$0xff] %vm383_vm0, %v1315_v43 }
  0x30   : > { %387 = vst.msk [vmem:[#allocation2 + $0x18] sm:$0xff] %vm383_vm0, %v1315_v43 }
  0x31   : > { %780 = vperm.xlu0 %1286, %v714_v51   ;;  %388 = vst.msk [vmem:[#allocation2 + $0x20] sm:$0xff] %vm383_vm0, %v1315_v43  ;;  %v833_v51 = vld [vmem:[%s1677_s4 + $0x18] sm:$0xff] }
  0x32   : > { %785 = vperm.xlu1 %1287, %v715_v55   ;;  %389 = vst.msk [vmem:[#allocation2 + $0x28] sm:$0xff] %vm383_vm0, %v1315_v43  ;;  %1011 = vmatpush.msra.mxu3 %v833_v51  ;;  %v437_v55 = vunpack.c.2.s8 %v407_v40 }
  0x33   : > { %390 = vst.msk [vmem:[#allocation2 + $0x30] sm:$0xff] %vm383_vm0, %v1315_v43 }
  0x34   : > { %539 = vmatmul.f32.gmra.mxu0 %v442_v49  ;;  %391 = vst.msk [vmem:[#allocation2 + $0x38] sm:$0xff] %vm383_vm0, %v1315_v43  ;;  %v467_v49 = vcvt.s32.f32 %v435_v47  ;;  %1012 = vmatpush.msra.mxu3 %v832_v53 }
  0x35   : > { %604 = vmatmul.f32.gmra.mxu1 %v443_v50  ;;  %775 = vperm.xlu2 %1288, %v713_v9   ;;  %392 = vst.msk [vmem:[#allocation2 + $0x40] sm:$0xff] %vm383_vm0, %v1315_v43  ;;  %v837_v50 = vld [vmem:[%s1678_s5 + $0x18] sm:$0xff]  ;;  %v473_v12 = vld [vmem:[#allocation2 + $0x8] sm:$0xff] }
  0x36   : > { %393 = vst.msk [vmem:[#allocation2 + $0x48] sm:$0xff] %vm383_vm0, %v1315_v43  ;;  %898 = vmatpush.msra.mxu2 %v837_v50  ;;  %v474_v21 = vld [vmem:[#allocation2 + $0x10] sm:$0xff] }
  0x37   : > { %394 = vst.msk [vmem:[#allocation2 + $0x50] sm:$0xff] %vm383_vm0, %v1315_v43 }
  0x38   : > { %395 = vst.msk [vmem:[#allocation2 + $0x58] sm:$0xff] %vm383_vm0, %v1315_v43  ;;  %899 = vmatpush.msra.mxu2 %v836_v52 }
  0x39   : > { %795 = vperm.xlu0 %1286, %v717_v58   ;;  %396 = vst.msk [vmem:[#allocation2 + $0x60] sm:$0xff] %vm383_vm0, %v1315_v43  ;;  %v834_v58 = vld [vmem:[%s1678_s5] sm:$0xff] }
  0x3a   : > { %397 = vst.msk [vmem:[#allocation2 + $0x68] sm:$0xff] %vm383_vm0, %v1315_v43 }
  0x3b   : > { %398 = vst.msk [vmem:[#allocation2 + $0x70] sm:$0xff] %vm383_vm0, %v1315_v43 }
  0x3c   : > { %542 = vmatmul.f32.gmra.mxu0 %v444_v56  ;;  %399 = vst.msk [vmem:[#allocation2 + $0x78] sm:$0xff] %vm383_vm0, %v1315_v43  ;;  %v835_v56 = vld [vmem:[%s1678_s5 + $0x8] sm:$0xff] }
  0x3d   : > { %607 = vmatmul.f32.gmra.mxu1 %v445_v57  ;;  %790 = vperm.xlu2 %1288, %v716_v14   ;;  %v831_v57 = vld [vmem:[%s1677_s4 + $0x8] sm:$0xff] }
  0x3e   : > { %900 = vmatpush.msra.mxu2 %v835_v56  ;;  %1013 = vmatpush.msra.mxu3 %v831_v57  ;;  %v478_v57 = vld [vmem:[#allocation2 + $0x30] sm:$0xff] }
  0x40   : > { %901 = vmatpush.msra.mxu2 %v834_v58  ;;  %1014 = vmatpush.msra.mxu3 %v830_v59 }
  0x41   : > { %1241 = vmatmul.msk.f32.vlgmr.msra.gmra.mxu3 %vm383_vm0, %v814_v60 }
  0x44   : > { %545 = vmatmul.f32.gmra.mxu0 %v446_v62  ;;  %v469_v62 = vcvt.s32.f32 %v437_v55  ;;  %v822_v55 = vld [vmem:[%s1549_s22 + $0x40] sm:$0xff] }
  0x45   : > { %610 = vmatmul.f32.gmra.mxu1 %v447_v63  ;;  %v438_v63 = vunpack.c.3.s8 %v406_v39  ;;  %v476_v39 = vld [vmem:[#allocation2 + $0x20] sm:$0xff] }
  0x47   : > { %v470_v2 = vcvt.s32.f32 %v438_v63 }
  0x49   : > { %1242 = vmatmul.msk.f32.gmra.mxu3 %vm383_vm0, %v815_v1 }
  0x4c   : > { %548 = vmatmul.f32.gmra.mxu0 %v448_v5 }
  0x4d   : > { %613 = vmatmul.f32.gmra.mxu1 %v449_v6  ;;  %v472_v6 = vld [vmem:[#allocation2] sm:$0xff] }
  0x51   : > { %1243 = vmatmul.msk.f32.gmra.mxu3 %vm383_vm0, %v816_v4 }
  0x54   : > { %551 = vmatmul.f32.gmra.mxu0 %v450_v10  ;;  %v817_v10 = vld [vmem:[%s1549_s22 + $0x18] sm:$0xff] }
  0x55   : > { %616 = vmatmul.f32.gmra.mxu1 %v451_v11 }
  0x59   : > { %1244 = vmatmul.msk.f32.gmra.mxu3 %vm383_vm0, %v817_v10 }
  0x5c   : > { %554 = vmatmul.f32.gmra.mxu0 %v452_v15 }
  0x5d   : > { %619 = vmatmul.f32.gmra.mxu1 %v453_v16 }
  0x64   : > { %557 = vmatmul.f32.gmra.mxu0 %v454_v19  ;;  %v818_v19 = vld [vmem:[%s1549_s22 + $0x20] sm:$0xff] }
  0x65   : > { %622 = vmatmul.f32.gmra.mxu1 %v455_v20  ;;  %1245 = vmatmul.msk.f32.gmra.mxu3 %vm383_vm0, %v818_v19 }
  0x6c   : > { %560 = vmatmul.f32.gmra.mxu0 %v456_v25 }
  0x6d   : > { %625 = vmatmul.f32.gmra.mxu1 %v457_v26  ;;  %1246 = vmatmul.msk.f32.gmra.mxu3 %vm383_vm0, %v819_v28 }
  0x74   : > { %563 = vmatmul.f32.gmra.mxu0 %v458_v29 }
  0x75   : > { %628 = vmatmul.f32.gmra.mxu1 %v459_v30  ;;  %v475_v30 = vld [vmem:[#allocation2 + $0x18] sm:$0xff] }
  0x76   : > { %v741_v51 = vpop.permute.xlu2 %740 }
  0x7c   : > { %566 = vmatmul.f32.gmra.mxu0 %v460_v33 }
  0x7d   : > { %631 = vmatmul.f32.gmra.mxu1 %v461_v34 }
  0x83   : > { %v721_v15 = vpop.permute.xlu0 %720 }
  0x84   : > { %569 = vmatmul.f32.gmra.mxu0 %v462_v37  ;;  %v731_v33 = vpop.permute.xlu1 %730  ;;  %v820_v37 = vld [vmem:[%s1549_s22 + $0x30] sm:$0xff] }
  0x85   : > { %634 = vmatmul.f32.gmra.mxu1 %v463_v38  ;;  %1247 = vmatmul.msk.f32.gmra.mxu3 %vm383_vm0, %v820_v37 }
  0x8b   : > { %v726_v25 = vpop.permute.xlu0 %725 }
  0x8c   : > { %572 = vmatmul.f32.gmra.mxu0 %v464_v44  ;;  %v736_v43 = vpop.permute.xlu1 %735 }
  0x8d   : > { %637 = vmatmul.f32.gmra.mxu1 %v465_v45  ;;  %1248 = vmatmul.msk.f32.gmra.mxu3 %vm383_vm0, %v821_v46 }
  0x94   : > { %575 = vmatmul.f32.gmra.mxu0 %v466_v48  ;;  %v477_v48 = vld [vmem:[#allocation2 + $0x28] sm:$0xff] }
  0x95   : > { %640 = vmatmul.f32.gmra.mxu1 %v467_v49  ;;  %1249 = vmatmul.msk.f32.gmra.mxu3 %vm383_vm0, %v822_v55 }
  0x9c   : > { %578 = vmatmul.f32.gmra.mxu0 %v468_v61  ;;  %v746_v61 = vpop.permute.xlu2 %745 }
  0x9d   : > { %643 = vmatmul.f32.gmra.mxu1 %v469_v62  ;;  %1250 = vmatmul.msk.f32.gmra.mxu3 %vm383_vm0, %v823_v0  ;;  %v486_v0 = vld [vmem:[#allocation2 + $0x70] sm:$0xff] }
  0xa4   : > { %581 = vmatmul.f32.gmra.mxu0 %v470_v2  ;;  %v479_v2 = vld [vmem:[#allocation2 + $0x38] sm:$0xff] }
  0xa5   : > { %646 = vmatmul.f32.gmra.mxu1 %v471_v3 }
  0xa9   : > { %v537_v5 = vpop.f32.mrf.mxu0 }
  0xaa   : > { %v602_v7 = vpop.f32.mrf.mxu1 }
  0xab   : > { %v603_v8 = vadd.f32 %v602_v7, %v537_v5 }
  0xad   : > { %v650_v9 = vadd.f32 %v603_v8, %v472_v6  ;;  %v751_v6 = vpop.permute.xlu0 %750 }
  0xaf   : > { %667 = vst.msk [vmem:[#allocation2] sm:$0xff] %vm383_vm0, %v650_v9  ;;  %v824_v9 = vld [vmem:[%s1549_s22 + $0x50] sm:$0xff] }
  0xb0   : > { %1251 = vmatmul.msk.f32.gmra.mxu3 %vm383_vm0, %v824_v9  ;;  %v487_v9 = vld [vmem:[#allocation2 + $0x78] sm:$0xff] }
  0xb1   : > { %v540_v11 = vpop.f32.mrf.mxu0 }
  0xb2   : > { %v605_v13 = vpop.f32.mrf.mxu1 }
  0xb3   : > { %v606_v14 = vadd.f32 %v605_v13, %v540_v11  ;;  %v480_v11 = vld [vmem:[#allocation2 + $0x40] sm:$0xff] }
  0xb5   : > { %v651_v16 = vadd.f32 %v606_v14, %v473_v12 }
  0xb6   : > { %v686_v17 = vld [vmem:[#allocation2] sm:$0xff] }
  0xb7   : > { %668 = vst.msk [vmem:[#allocation2 + $0x8] sm:$0xff] %vm383_vm0, %v651_v16  ;;  %v798_v18 = vmul.f32 %v721_v15, %v686_v17  ;;  %v756_v15 = vpop.permute.xlu1 %755 }
  0xb9   : > { %1225 = vmatmul.msk.f32.vlgmr.msra.gmra.mxu2 %vm383_vm0, %v798_v18  ;;  %v543_v20 = vpop.f32.mrf.mxu0  ;;  %v825_v18 = vld [vmem:[%s1549_s22 + $0x58] sm:$0xff] }
  0xba   : > { %v608_v22 = vpop.f32.mrf.mxu1  ;;  %1252 = vmatmul.msk.f32.gmra.mxu3 %vm383_vm0, %v825_v18 }
  0xbb   : > { %v609_v23 = vadd.f32 %v608_v22, %v543_v20  ;;  %v481_v20 = vld [vmem:[#allocation2 + $0x48] sm:$0xff] }
  0xbd   : > { %v652_v24 = vadd.f32 %v609_v23, %v474_v21 }
  0xbe   : > { %v687_v26 = vld [vmem:[#allocation2 + $0x8] sm:$0xff] }
  0xbf   : > { %669 = vst.msk [vmem:[#allocation2 + $0x10] sm:$0xff] %vm383_vm0, %v652_v24  ;;  %v799_v27 = vmul.f32 %v726_v25, %v687_v26  ;;  %v761_v24 = vpop.permute.xlu2 %760 }
  0xc1   : > { %1226 = vmatmul.msk.f32.gmra.mxu2 %vm383_vm0, %v799_v27  ;;  %v546_v29 = vpop.f32.mrf.mxu0  ;;  %v826_v27 = vld [vmem:[%s1549_s22 + $0x60] sm:$0xff] }
  0xc2   : > { %v611_v31 = vpop.f32.mrf.mxu1  ;;  %1253 = vmatmul.msk.f32.gmra.mxu3 %vm383_vm0, %v826_v27 }
  0xc3   : > { %v612_v32 = vadd.f32 %v611_v31, %v546_v29  ;;  %v482_v29 = vld [vmem:[#allocation2 + $0x50] sm:$0xff] }
  0xc5   : > { %v653_v34 = vadd.f32 %v612_v32, %v475_v30 }
  0xc6   : > { %v688_v35 = vld [vmem:[#allocation2 + $0x10] sm:$0xff] }
  0xc7   : > { %670 = vst.msk [vmem:[#allocation2 + $0x18] sm:$0xff] %vm383_vm0, %v653_v34  ;;  %v800_v36 = vmul.f32 %v731_v33, %v688_v35  ;;  %v766_v33 = vpop.permute.xlu0 %765 }
  0xc9   : > { %1227 = vmatmul.msk.f32.gmra.mxu2 %vm383_vm0, %v800_v36  ;;  %v549_v38 = vpop.f32.mrf.mxu0  ;;  %v827_v36 = vld [vmem:[%s1549_s22 + $0x68] sm:$0xff] }
  0xca   : > { %v614_v40 = vpop.f32.mrf.mxu1  ;;  %1254 = vmatmul.msk.f32.gmra.mxu3 %vm383_vm0, %v827_v36 }
  0xcb   : > { %v615_v41 = vadd.f32 %v614_v40, %v549_v38  ;;  %v483_v38 = vld [vmem:[#allocation2 + $0x58] sm:$0xff] }
  0xcd   : > { %v654_v42 = vadd.f32 %v615_v41, %v476_v39 }
  0xce   : > { %v689_v44 = vld [vmem:[#allocation2 + $0x18] sm:$0xff] }
  0xcf   : > { %671 = vst.msk [vmem:[#allocation2 + $0x20] sm:$0xff] %vm383_vm0, %v654_v42  ;;  %v801_v45 = vmul.f32 %v736_v43, %v689_v44  ;;  %v771_v42 = vpop.permute.xlu1 %770 }
  0xd1   : > { %1228 = vmatmul.msk.f32.gmra.mxu2 %vm383_vm0, %v801_v45  ;;  %v552_v47 = vpop.f32.mrf.mxu0  ;;  %v828_v45 = vld [vmem:[%s1549_s22 + $0x70] sm:$0xff] }
  0xd2   : > { %v617_v49 = vpop.f32.mrf.mxu1  ;;  %1255 = vmatmul.msk.f32.gmra.mxu3 %vm383_vm0, %v828_v45 }
  0xd3   : > { %v618_v50 = vadd.f32 %v617_v49, %v552_v47  ;;  %v484_v47 = vld [vmem:[#allocation2 + $0x60] sm:$0xff] }
  0xd5   : > { %v655_v52 = vadd.f32 %v618_v50, %v477_v48 }
  0xd6   : > { %v690_v53 = vld [vmem:[#allocation2 + $0x20] sm:$0xff] }
  0xd7   : > { %672 = vst.msk [vmem:[#allocation2 + $0x28] sm:$0xff] %vm383_vm0, %v655_v52  ;;  %v802_v54 = vmul.f32 %v741_v51, %v690_v53  ;;  %v776_v51 = vpop.permute.xlu2 %775 }
  0xd9   : > { %1229 = vmatmul.msk.f32.gmra.mxu2 %vm383_vm0, %v802_v54  ;;  %v555_v56 = vpop.f32.mrf.mxu0  ;;  %v829_v54 = vld [vmem:[%s1549_s22 + $0x78] sm:$0xff] }
  0xda   : > { %v620_v58 = vpop.f32.mrf.mxu1  ;;  %1256 = vmatmul.msk.f32.gmra.mxu3 %vm383_vm0, %v829_v54 }
  0xdb   : > { %v621_v59 = vadd.f32 %v620_v58, %v555_v56  ;;  %v485_v56 = vld [vmem:[#allocation2 + $0x68] sm:$0xff] }
  0xdd   : > { %v656_v60 = vadd.f32 %v621_v59, %v478_v57 }
  0xde   : > { %v691_v62 = vld [vmem:[#allocation2 + $0x28] sm:$0xff] }
  0xdf   : > { %673 = vst.msk [vmem:[#allocation2 + $0x30] sm:$0xff] %vm383_vm0, %v656_v60  ;;  %v803_v63 = vmul.f32 %v746_v61, %v691_v62  ;;  %v781_v60 = vpop.permute.xlu0 %780 }
  0xe1   : > { %1230 = vmatmul.msk.f32.gmra.mxu2 %vm383_vm0, %v803_v63  ;;  %v558_v1 = vpop.f32.mrf.mxu0 }
  0xe2   : > { %v623_v3 = vpop.f32.mrf.mxu1 }
  0xe3   : > { %v624_v4 = vadd.f32 %v623_v3, %v558_v1  ;;  %v1016_v3 = vpop.f32.mrf.mxu3 }
  0xe5   : > { %v657_v5 = vadd.f32 %v624_v4, %v479_v2 }
  0xe6   : > { %v692_v7 = vld [vmem:[#allocation2 + $0x30] sm:$0xff] }
  0xe7   : > { %674 = vst.msk [vmem:[#allocation2 + $0x38] sm:$0xff] %vm383_vm0, %v657_v5  ;;  %v804_v8 = vmul.f32 %v751_v6, %v692_v7  ;;  %v786_v5 = vpop.permute.xlu1 %785 }
  0xe9   : > { %1231 = vmatmul.msk.f32.gmra.mxu2 %vm383_vm0, %v804_v8  ;;  %v561_v10 = vpop.f32.mrf.mxu0 }
  0xea   : > { %v626_v12 = vpop.f32.mrf.mxu1 }
  0xeb   : > { %v627_v13 = vadd.f32 %v626_v12, %v561_v10 }
  0xed   : > { %v658_v14 = vadd.f32 %v627_v13, %v480_v11  ;;  %v791_v13 = vpop.permute.xlu2 %790 }
  0xee   : > { %v693_v16 = vld [vmem:[#allocation2 + $0x38] sm:$0xff] }
  0xef   : > { %675 = vst.msk [vmem:[#allocation2 + $0x40] sm:$0xff] %vm383_vm0, %v658_v14  ;;  %v805_v17 = vmul.f32 %v756_v15, %v693_v16  ;;  %v1019_v15 = vpop.f32.mrf.mxu3 }
  0xf1   : > { %1232 = vmatmul.msk.f32.gmra.mxu2 %vm383_vm0, %v805_v17  ;;  %v564_v19 = vpop.f32.mrf.mxu0  ;;  %v796_v17 = vpop.permute.xlu0 %795 }
  0xf2   : > { %v629_v21 = vpop.f32.mrf.mxu1 }
  0xf3   : > { %v630_v22 = vadd.f32 %v629_v21, %v564_v19 }
  0xf5   : > { %v659_v23 = vadd.f32 %v630_v22, %v481_v20  ;;  %v1624_v22 = vld [vmem:[%s1679_s6] ss:$0 sm:$0xff] }
  0xf6   : > { %v694_v25 = vld [vmem:[#allocation2 + $0x40] sm:$0xff] }
  0xf7   : > { %676 = vst.msk [vmem:[#allocation2 + $0x48] sm:$0xff] %vm383_vm0, %v659_v23  ;;  %v806_v26 = vmul.f32 %v761_v24, %v694_v25  ;;  %v1022_v20 = vpop.f32.mrf.mxu3 }
  0xf9   : > { %1233 = vmatmul.msk.f32.gmra.mxu2 %vm383_vm0, %v806_v26  ;;  %v567_v28 = vpop.f32.mrf.mxu0 }
  0xfa   : > { %v632_v30 = vpop.f32.mrf.mxu1 }
  0xfb   : > { %v633_v31 = vadd.f32 %v632_v30, %v567_v28 }
  0xfd   : > { %v660_v32 = vadd.f32 %v633_v31, %v482_v29 }
  0xfe   : > { %v695_v34 = vld [vmem:[#allocation2 + $0x48] sm:$0xff] }
  0xff   : > { %677 = vst.msk [vmem:[#allocation2 + $0x50] sm:$0xff] %vm383_vm0, %v660_v32  ;;  %v807_v35 = vmul.f32 %v766_v33, %v695_v34  ;;  %v1025_v21 = vpop.f32.mrf.mxu3 }
 0x101   : > { %1234 = vmatmul.msk.f32.gmra.mxu2 %vm383_vm0, %v807_v35  ;;  %v570_v37 = vpop.f32.mrf.mxu0 }
 0x102   : > { %v635_v39 = vpop.f32.mrf.mxu1 }
 0x103   : > { %v636_v40 = vadd.f32 %v635_v39, %v570_v37 }
 0x105   : > { %v661_v41 = vadd.f32 %v636_v40, %v483_v38 }
 0x106   : > { %v696_v43 = vld [vmem:[#allocation2 + $0x50] sm:$0xff] }
 0x107   : > { %678 = vst.msk [vmem:[#allocation2 + $0x58] sm:$0xff] %vm383_vm0, %v661_v41  ;;  %v808_v44 = vmul.f32 %v771_v42, %v696_v43  ;;  %v1028_v27 = vpop.f32.mrf.mxu3 }
 0x109   : > { %1235 = vmatmul.msk.f32.gmra.mxu2 %vm383_vm0, %v808_v44  ;;  %v573_v46 = vpop.f32.mrf.mxu0 }
 0x10a   : > { %v638_v48 = vpop.f32.mrf.mxu1 }
 0x10b   : > { %v639_v49 = vadd.f32 %v638_v48, %v573_v46 }
 0x10d   : > { %v662_v50 = vadd.f32 %v639_v49, %v484_v47 }
 0x10e   : > { %v697_v52 = vld [vmem:[#allocation2 + $0x58] sm:$0xff] }
 0x10f   : > { %679 = vst.msk [vmem:[#allocation2 + $0x60] sm:$0xff] %vm383_vm0, %v662_v50  ;;  %v809_v53 = vmul.f32 %v776_v51, %v697_v52  ;;  %v1031_v32 = vpop.f32.mrf.mxu3 }
 0x111   : > { %1236 = vmatmul.msk.f32.gmra.mxu2 %vm383_vm0, %v809_v53  ;;  %v576_v55 = vpop.f32.mrf.mxu0 }
 0x112   : > { %v641_v57 = vpop.f32.mrf.mxu1 }
 0x113   : > { %v642_v58 = vadd.f32 %v641_v57, %v576_v55 }
 0x115   : > { %v663_v59 = vadd.f32 %v642_v58, %v485_v56 }
 0x116   : > { %v698_v61 = vld [vmem:[#allocation2 + $0x60] sm:$0xff] }
 0x117   : > { %680 = vst.msk [vmem:[#allocation2 + $0x68] sm:$0xff] %vm383_vm0, %v663_v59  ;;  %v810_v62 = vmul.f32 %v781_v60, %v698_v61  ;;  %v1034_v37 = vpop.f32.mrf.mxu3 }
 0x119   : > { %1237 = vmatmul.msk.f32.gmra.mxu2 %vm383_vm0, %v810_v62  ;;  %v579_v63 = vpop.f32.mrf.mxu0 }
 0x11a   : > { %v644_v1 = vpop.f32.mrf.mxu1 }
 0x11b   : > { %v645_v2 = vadd.f32 %v644_v1, %v579_v63 }
 0x11d   : > { %v664_v4 = vadd.f32 %v645_v2, %v486_v0 }
 0x11e   : > { %v699_v6 = vld [vmem:[#allocation2 + $0x68] sm:$0xff] }
 0x11f   : > { %681 = vst.msk [vmem:[#allocation2 + $0x70] sm:$0xff] %vm383_vm0, %v664_v4  ;;  %v811_v7 = vmul.f32 %v786_v5, %v699_v6  ;;  %v1037_v41 = vpop.f32.mrf.mxu3 }
 0x121   : > { %1238 = vmatmul.msk.f32.gmra.mxu2 %vm383_vm0, %v811_v7  ;;  %v582_v8 = vpop.f32.mrf.mxu0 }
 0x122   : > { %v647_v10 = vpop.f32.mrf.mxu1 }
 0x123   : > { %v648_v11 = vadd.f32 %v647_v10, %v582_v8 }
 0x125   : > { %v665_v12 = vadd.f32 %v648_v11, %v487_v9 }
 0x126   : > { %v700_v14 = vld [vmem:[#allocation2 + $0x70] sm:$0xff] }
 0x127   : > { %682 = vst.msk [vmem:[#allocation2 + $0x78] sm:$0xff] %vm383_vm0, %v665_v12  ;;  %v812_v16 = vmul.f32 %v791_v13, %v700_v14  ;;  %v1040_v46 = vpop.f32.mrf.mxu3 }
 0x129   : > { %1239 = vmatmul.msk.f32.gmra.mxu2 %vm383_vm0, %v812_v16 }
 0x12e   : > { %v701_v18 = vld [vmem:[#allocation2 + $0x78] sm:$0xff] }
 0x12f   : > { %v813_v19 = vmul.f32 %v796_v17, %v701_v18  ;;  %v1043_v51 = vpop.f32.mrf.mxu3 }
 0x131   : > { %1240 = vmatmul.msk.f32.gmra.mxu2 %vm383_vm0, %v813_v19 }
 0x137   : > { %v1046_v56 = vpop.f32.mrf.mxu3 }
 0x13c   : > { %v903_v23 = vpop.f32.mrf.mxu2 }
 0x13d   : > { %v1017_v24 = vadd.f32 %v1016_v3, %v903_v23 }
 0x13f   : > { %v1068_v25 = vadd.f32 %v1624_v22, %v1017_v24  ;;  %v1049_v60 = vpop.f32.mrf.mxu3 }
 0x141   : > { %1084 = vst [vmem:[%s1630_s9] sm:$0xff] %v1068_v25 }
 0x144   : > { %v906_v26 = vpop.f32.mrf.mxu2 }
 0x145   : > { %v1020_v28 = vadd.f32 %v1019_v15, %v906_v26 }
 0x147   : > { %v1069_v29 = vadd.f32 %v1624_v22, %v1020_v28  ;;  %v1052_v1 = vpop.f32.mrf.mxu3 }
 0x149   : > { %1085 = vst [vmem:[%s1630_s9 + $0x8] sm:$0xff] %v1069_v29 }
 0x14c   : > { %v909_v30 = vpop.f32.mrf.mxu2 }
 0x14d   : > { %v1023_v31 = vadd.f32 %v1022_v20, %v909_v30 }
 0x14f   : > { %v1070_v33 = vadd.f32 %v1624_v22, %v1023_v31  ;;  %v1055_v6 = vpop.f32.mrf.mxu3 }
 0x151   : > { %1086 = vst [vmem:[%s1630_s9 + $0x10] sm:$0xff] %v1070_v33 }
 0x154   : > { %v912_v34 = vpop.f32.mrf.mxu2 }
 0x155   : > { %v1026_v35 = vadd.f32 %v1025_v21, %v912_v34 }
 0x157   : > { %v1071_v36 = vadd.f32 %v1624_v22, %v1026_v35  ;;  %v1058_v11 = vpop.f32.mrf.mxu3 }
 0x159   : > { %1087 = vst [vmem:[%s1630_s9 + $0x18] sm:$0xff] %v1071_v36 }
 0x15c   : > { %v915_v38 = vpop.f32.mrf.mxu2 }
 0x15d   : > { %v1029_v39 = vadd.f32 %v1028_v27, %v915_v38 }
 0x15f   : > { %v1072_v40 = vadd.f32 %v1624_v22, %v1029_v39  ;;  %v1061_v15 = vpop.f32.mrf.mxu3 }
 0x161   : > { %1088 = vst [vmem:[%s1630_s9 + $0x20] sm:$0xff] %v1072_v40 }
 0x164   : > { %v918_v42 = vpop.f32.mrf.mxu2 }
 0x165   : > { %v1032_v43 = vadd.f32 %v1031_v32, %v918_v42 }
 0x167   : > { %v1073_v44 = vadd.f32 %v1624_v22, %v1032_v43 }
 0x169   : > { %1089 = vst [vmem:[%s1630_s9 + $0x28] sm:$0xff] %v1073_v44 }
 0x16c   : > { %v921_v45 = vpop.f32.mrf.mxu2 }
 0x16d   : > { %v1035_v47 = vadd.f32 %v1034_v37, %v921_v45 }
 0x16f   : > { %v1074_v48 = vadd.f32 %v1624_v22, %v1035_v47 }
 0x171   : > { %1090 = vst [vmem:[%s1630_s9 + $0x30] sm:$0xff] %v1074_v48 }
 0x174   : > { %v924_v49 = vpop.f32.mrf.mxu2 }
 0x175   : > { %v1038_v50 = vadd.f32 %v1037_v41, %v924_v49 }
 0x177   : > { %v1075_v52 = vadd.f32 %v1624_v22, %v1038_v50 }
 0x179   : > { %1091 = vst [vmem:[%s1630_s9 + $0x38] sm:$0xff] %v1075_v52 }
 0x17c   : > { %v927_v53 = vpop.f32.mrf.mxu2 }
 0x17d   : > { %v1041_v54 = vadd.f32 %v1040_v46, %v927_v53 }
 0x17f   : > { %v1076_v55 = vadd.f32 %v1624_v22, %v1041_v54 }
 0x181   : > { %1092 = vst [vmem:[%s1630_s9 + $0x40] sm:$0xff] %v1076_v55 }
 0x184   : > { %v930_v57 = vpop.f32.mrf.mxu2 }
 0x185   : > { %v1044_v58 = vadd.f32 %v1043_v51, %v930_v57 }
 0x187   : > { %v1077_v59 = vadd.f32 %v1624_v22, %v1044_v58 }
 0x189   : > { %1093 = vst [vmem:[%s1630_s9 + $0x48] sm:$0xff] %v1077_v59 }
 0x18c   : > { %v933_v61 = vpop.f32.mrf.mxu2 }
 0x18d   : > { %v1047_v62 = vadd.f32 %v1046_v56, %v933_v61 }
 0x18f   : > { %v1078_v63 = vadd.f32 %v1624_v22, %v1047_v62 }
 0x191   : > { %1094 = vst [vmem:[%s1630_s9 + $0x50] sm:$0xff] %v1078_v63 }
 0x194   : > { %v936_v0 = vpop.f32.mrf.mxu2 }
 0x195   : > { %v1050_v2 = vadd.f32 %v1049_v60, %v936_v0 }
 0x197   : > { %v1079_v3 = vadd.f32 %v1624_v22, %v1050_v2 }
 0x199   : > { %1095 = vst [vmem:[%s1630_s9 + $0x58] sm:$0xff] %v1079_v3 }
 0x19c   : > { %v939_v4 = vpop.f32.mrf.mxu2 }
 0x19d   : > { %v1053_v5 = vadd.f32 %v1052_v1, %v939_v4 }
 0x19f   : > { %v1080_v7 = vadd.f32 %v1624_v22, %v1053_v5 }
 0x1a1   : > { %1096 = vst [vmem:[%s1630_s9 + $0x60] sm:$0xff] %v1080_v7 }
 0x1a4   : > { %v942_v8 = vpop.f32.mrf.mxu2 }
 0x1a5   : > { %v1056_v9 = vadd.f32 %v1055_v6, %v942_v8 }
 0x1a7   : > { %v1081_v10 = vadd.f32 %v1624_v22, %v1056_v9 }
 0x1a9   : > { %1097 = vst [vmem:[%s1630_s9 + $0x68] sm:$0xff] %v1081_v10 }
 0x1ac   : > { %v945_v12 = vpop.f32.mrf.mxu2 }
 0x1ad   : > { %v1059_v13 = vadd.f32 %v1058_v11, %v945_v12 }
 0x1af   : > { %v1082_v14 = vadd.f32 %v1624_v22, %v1059_v13 }
 0x1b1   : > { %1098 = vst [vmem:[%s1630_s9 + $0x70] sm:$0xff] %v1082_v14 }
 0x1b4   : > { %v948_v16 = vpop.f32.mrf.mxu2 }
 0x1b5   : > { %v1062_v17 = vadd.f32 %v1061_v15, %v948_v16 }
 0x1b7   : > { %v1083_v18 = vadd.f32 %v1624_v22, %v1062_v17 }
 0x1b9   : > { %1099 = vst [vmem:[%s1630_s9 + $0x78] sm:$0xff] %v1083_v18 }
 0x1ba PF: > { %s17_s26 = sadd.s32 1, %s1312_s26   ;;  %s1681_s24 = smov %s1308_s25 }
 0x1bb   : > { %p14_p6 = scmp.ge.s32.totalorder %s17_s26, 4   ;;  %s1682_s25 = smov %s1684_s27 }
 0x1bd   :  { %16 = sbr.rel (!%p14_p6) target bundleno = 2 (0x2), region = 95 }

// kernel: sage_model.2
= control target key start
LH: loop header
LB: loop body
LE: loop exit
PB: predicated region body
PF: predicated region fallthrough
CT: control target
= control target key end

     0   :  { %s1372_s24 = smov 0   ;;  %s1374_s25 = smov 0   ;;  %s1689_s0 = inlined_call_operand.vmem [shape: s8[256,256], index: 0, kind: input, shape index: {}]   ;;  %s1690_s1 = inlined_call_operand.vmem [shape: f32[256,32], index: 1, kind: input, shape index: {}, may-alias: {1,2}]   ;;  %s1691_s2 = inlined_call_operand.vmem [shape: f32[256,32], index: 2, kind: input, shape index: {}, may-alias: {1,2}]   ;;  %s1692_s3 = inlined_call_operand.vmem [shape: f32[256,1], index: 3, kind: input, shape index: {}]   ;;  %s1693_s4 = inlined_call_operand.vmem [shape: f32[32,128], index: 4, kind: input, shape index: {}]   ;;  %s1694_s5 = inlined_call_operand.vmem [shape: f32[32,128], index: 5, kind: input, shape index: {}]   ;;  %s1695_s6 = inlined_call_operand.vmem [shape: f32[1,128], index: 6, kind: input, shape index: {}]   ;;  %s1696_s7 = inlined_call_operand.vmem [shape: f32[256,128], index: 7, kind: output, shape index: {}]  }
   0x1   :  { %s1376_s26 = smov 0  }
   0x2 LB: > { %s29_s27 = sadd.s32 1, %s1324_s25  ;;  %p1231_p0 = scmp.ge.s32.totalorder %s1328_s26, 1  ;;  %s1328_s26 = sphi %s1376_s26, %s17_s26   ;;  %s1324_s25 = sphi %s1374_s25, %s1698_s25   ;;  %s1320_s24 = sphi %s1372_s24, %s1697_s24  }
   0x3   : > { %p31_p1 = scmp.ge.s32.totalorder %s29_s27, 2  ;;  %p291_p2 = scmp.lt.s32.totalorder %s1328_s26, 3 }
   0x5   : > { %s1700_s27 = smov (%p31_p1, %s29_s27), 0  ;;  %p292_p3 = pnand %p1231_p0, %p291_p2 }
   0x6   : > { %s1235_s11 = sshll.u32 (!%p292_p3), %s1320_s24, 4  ;;  %s1232_s22 = sshll.u32 (!%p292_p3), %s1320_s24, 2 }
   0x7   : > { %295 = sbr.rel (%p292_p3) target bundleno = 444 (0x1bc), region = 48  ;;  %p356_p4 = scmp.lt.s32.totalorder (!%p292_p3), %s1235_s11, 31 }
   0x8   : > { %p345_p5 = scmp.lt.s32.totalorder (!%p292_p3), %s1232_s22, 7 }
   0xc   : > { %v503_v0 = vld [vmem:[%s1691_s2 + $0x78] sm:$0xff]  ;;  %v502_v2 = vld [vmem:[%s1691_s2 + $0x70] sm:$0xff]  ;;  %v501_v4 = vld [vmem:[%s1691_s2 + $0x68] sm:$0xff]  ;;  %v1330_v6 = vmov 0   ;;  %s1702_s11 = smov (!%p356_p4, %s1235_s11), 31  ;;  %s1704_s22 = smov (!%p345_p5, %s1232_s22), 7 }
   0xd   : > { %v519_v1 = vld [vmem:[%s1691_s2 + $0xf8] sm:$0xff]  ;;  %520 = vmatpush.msra.mxu0 %v503_v0  ;;  %v518_v3 = vld [vmem:[%s1691_s2 + $0xf0] sm:$0xff]  ;;  %v517_v5 = vld [vmem:[%s1691_s2 + $0xe8] sm:$0xff]  ;;  %1302 = vset.pattern.permute.xlu0 %v1330_v6  ;;  %s1418_s23 = sshll.u32 %s1702_s11, 3  ;;  %s1275_s10 = sshll.u32 %s1704_s22, 4  ;;  %vm383_vm0 = vcmask 261120  }
   0xe   : > { %585 = vmatpush.msra.mxu1 %v519_v1  ;;  %1303 = vset.pattern.permute.xlu1 %v1330_v6  ;;  %v500_v7 = vld [vmem:[%s1691_s2 + $0x60] sm:$0xff]  ;;  %v499_v9 = vld [vmem:[%s1691_s2 + $0x58] sm:$0xff]  ;;  %s1430_s12 = scalar_lea.vmem %s1692_s3, %s1418_s23  ;;  %v498_v12 = vld [vmem:[%s1691_s2 + $0x50] sm:$0xff]  ;;  %s1474_s20 = scalar_lea.vmem %s1689_s0, %s1275_s10 }
   0xf   : > { %521 = vmatpush.msra.mxu0 %v502_v2  ;;  %v516_v8 = vld [vmem:[%s1691_s2 + $0xe0] sm:$0xff]  ;;  %1304 = vset.pattern.permute.xlu2 %v1330_v6  ;;  %v515_v10 = vld [vmem:[%s1691_s2 + $0xd8] sm:$0xff]  ;;  %v514_v13 = vld [vmem:[%s1691_s2 + $0xd0] sm:$0xff]  ;;  %s1565_s22 = scalar_lea.vmem %s1690_s1, %s1418_s23  ;;  %s1647_s9 = scalar_lea.vmem %s1696_s7, %s1418_s23 }
  0x10   : > { %586 = vmatpush.msra.mxu1 %v518_v3  ;;  %v702_v11 = vld [vmem:[%s1430_s12] sm:$0xff]  ;;  %v497_v14 = vld [vmem:[%s1691_s2 + $0x48] sm:$0xff]  ;;  %v704_v18 = vld [vmem:[%s1430_s12 + $0x10] sm:$0xff] }
  0x11   : > { %522 = vmatpush.msra.mxu0 %v501_v4  ;;  %720 = vperm.xlu0 %1302, %v702_v11   ;;  %v513_v15 = vld [vmem:[%s1691_s2 + $0xc8] sm:$0xff]  ;;  %v496_v16 = vld [vmem:[%s1691_s2 + $0x40] sm:$0xff]  ;;  %v495_v20 = vld [vmem:[%s1691_s2 + $0x38] sm:$0xff] }
  0x12   : > { %587 = vmatpush.msra.mxu1 %v517_v5  ;;  %v512_v17 = vld [vmem:[%s1691_s2 + $0xc0] sm:$0xff]  ;;  %v703_v19 = vld [vmem:[%s1430_s12 + $0x8] sm:$0xff]  ;;  %v511_v21 = vld [vmem:[%s1691_s2 + $0xb8] sm:$0xff]  ;;  %730 = vperm.xlu1 %1303, %v704_v18  }
  0x13   : > { %523 = vmatpush.msra.mxu0 %v500_v7  ;;  %v494_v22 = vld [vmem:[%s1691_s2 + $0x30] sm:$0xff]  ;;  %v493_v24 = vld [vmem:[%s1691_s2 + $0x28] sm:$0xff]  ;;  %v705_v26 = vld [vmem:[%s1430_s12 + $0x18] sm:$0xff] }
  0x14   : > { %588 = vmatpush.msra.mxu1 %v516_v8  ;;  %v510_v23 = vld [vmem:[%s1691_s2 + $0xb0] sm:$0xff]  ;;  %v509_v25 = vld [vmem:[%s1691_s2 + $0xa8] sm:$0xff]  ;;  %v492_v27 = vld [vmem:[%s1691_s2 + $0x20] sm:$0xff] }
  0x15   : > { %524 = vmatpush.msra.mxu0 %v499_v9  ;;  %v508_v28 = vld [vmem:[%s1691_s2 + $0xa0] sm:$0xff]  ;;  %v708_v29 = vld [vmem:[%s1430_s12 + $0x30] sm:$0xff]  ;;  %v401_v31 = vld [vmem:[%s1474_s20 + $0x8] sm:$0xff] }
  0x16   : > { %589 = vmatpush.msra.mxu1 %v515_v10  ;;  %v400_v30 = vld [vmem:[%s1474_s20] sm:$0xff]  ;;  %v491_v32 = vld [vmem:[%s1691_s2 + $0x18] sm:$0xff]  ;;  %v490_v34 = vld [vmem:[%s1691_s2 + $0x10] sm:$0xff]  ;;  %v409_v37 = vunpack.c.0.s8 %v401_v31  ;;  %v411_v47 = vunpack.c.1.s8 %v401_v31  ;;  %v413_v53 = vunpack.c.2.s8 %v401_v31  ;;  %v415_v60 = vunpack.c.3.s8 %v401_v31 }
  0x17   : > { %525 = vmatpush.msra.mxu0 %v498_v12  ;;  %v507_v33 = vld [vmem:[%s1691_s2 + $0x98] sm:$0xff]  ;;  %v506_v35 = vld [vmem:[%s1691_s2 + $0x90] sm:$0xff]  ;;  %v408_v36 = vunpack.c.0.s8 %v400_v30  ;;  %v489_v38 = vld [vmem:[%s1691_s2 + $0x8] sm:$0xff]  ;;  %v410_v46 = vunpack.c.1.s8 %v400_v30  ;;  %v412_v52 = vunpack.c.2.s8 %v400_v30  ;;  %v414_v59 = vunpack.c.3.s8 %v400_v30 }
  0x18   : > { %590 = vmatpush.msra.mxu1 %v514_v13  ;;  %v505_v39 = vld [vmem:[%s1691_s2 + $0x88] sm:$0xff]  ;;  %v709_v40 = vld [vmem:[%s1430_s12 + $0x38] sm:$0xff]  ;;  %v488_v41 = vld [vmem:[%s1691_s2] sm:$0xff]  ;;  %v441_v44 = vcvt.s32.f32 %v409_v37  ;;  %v443_v50 = vcvt.s32.f32 %v411_v47  ;;  %v445_v57 = vcvt.s32.f32 %v413_v53  ;;  %v447_v63 = vcvt.s32.f32 %v415_v60 }
  0x19   : > { %526 = vmatpush.msra.mxu0 %v497_v14  ;;  %725 = vperm.xlu0 %1302, %v703_v19   ;;  %v504_v42 = vld [vmem:[%s1691_s2 + $0x80] sm:$0xff]  ;;  %v440_v43 = vcvt.s32.f32 %v408_v36  ;;  %v711_v45 = vld [vmem:[%s1430_s12 + $0x48] sm:$0xff]  ;;  %v712_v48 = vld [vmem:[%s1430_s12 + $0x50] sm:$0xff]  ;;  %v442_v49 = vcvt.s32.f32 %v410_v46  ;;  %v444_v56 = vcvt.s32.f32 %v412_v52  ;;  %v446_v62 = vcvt.s32.f32 %v414_v59 }
  0x1a   : > { %591 = vmatpush.msra.mxu1 %v513_v15  ;;  %735 = vperm.xlu1 %1303, %v705_v26   ;;  %v714_v51 = vld [vmem:[%s1430_s12 + $0x60] sm:$0xff]  ;;  %v715_v55 = vld [vmem:[%s1430_s12 + $0x68] sm:$0xff]  ;;  %v717_v58 = vld [vmem:[%s1430_s12 + $0x78] sm:$0xff] }
  0x1b   : > { %527 = vmatpush.msra.mxu0 %v496_v16  ;;  %v706_v54 = vld [vmem:[%s1430_s12 + $0x20] sm:$0xff]  ;;  %v707_v61 = vld [vmem:[%s1430_s12 + $0x28] sm:$0xff]  ;;  %v402_v0 = vld [vmem:[%s1474_s20 + $0x10] sm:$0xff] }
  0x1c   : > { %592 = vmatpush.msra.mxu1 %v512_v17  ;;  %740 = vperm.xlu2 %1304, %v706_v54   ;;  %v403_v1 = vld [vmem:[%s1474_s20 + $0x18] sm:$0xff]  ;;  %v416_v2 = vunpack.c.0.s8 %v402_v0  ;;  %v710_v4 = vld [vmem:[%s1430_s12 + $0x40] sm:$0xff]  ;;  %v418_v7 = vunpack.c.1.s8 %v402_v0  ;;  %v420_v12 = vunpack.c.2.s8 %v402_v0  ;;  %v716_v14 = vld [vmem:[%s1430_s12 + $0x70] sm:$0xff]  ;;  %v422_v17 = vunpack.c.3.s8 %v402_v0 }
  0x1d   : > { %528 = vmatpush.msra.mxu0 %v495_v20  ;;  %v417_v3 = vunpack.c.0.s8 %v403_v1  ;;  %v419_v8 = vunpack.c.1.s8 %v403_v1  ;;  %v713_v9 = vld [vmem:[%s1430_s12 + $0x58] sm:$0xff]  ;;  %v421_v13 = vunpack.c.2.s8 %v403_v1  ;;  %v423_v18 = vunpack.c.3.s8 %v403_v1  ;;  %v836_v52 = vld [vmem:[%s1694_s5 + $0x10] sm:$0xff]  ;;  %v830_v59 = vld [vmem:[%s1693_s4] sm:$0xff] }
  0x1e   : > { %593 = vmatpush.msra.mxu1 %v511_v21  ;;  %v448_v5 = vcvt.s32.f32 %v416_v2  ;;  %v450_v10 = vcvt.s32.f32 %v418_v7  ;;  %v452_v15 = vcvt.s32.f32 %v420_v12  ;;  %v454_v19 = vcvt.s32.f32 %v422_v17  ;;  %v404_v21 = vld [vmem:[%s1474_s20 + $0x20] sm:$0xff]  ;;  %v832_v53 = vld [vmem:[%s1693_s4 + $0x10] sm:$0xff]  ;;  %v815_v1 = vld [vmem:[%s1565_s22 + $0x8] sm:$0xff] }
  0x1f   : > { %529 = vmatpush.msra.mxu0 %v494_v22  ;;  %v449_v6 = vcvt.s32.f32 %v417_v3  ;;  %v451_v11 = vcvt.s32.f32 %v419_v8  ;;  %v453_v16 = vcvt.s32.f32 %v421_v13  ;;  %v455_v20 = vcvt.s32.f32 %v423_v18  ;;  %v405_v22 = vld [vmem:[%s1474_s20 + $0x28] sm:$0xff]  ;;  %v814_v60 = vld [vmem:[%s1565_s22] sm:$0xff] }
  0x20   : > { %594 = vmatpush.msra.mxu1 %v510_v23  ;;  %v424_v23 = vunpack.c.0.s8 %v404_v21  ;;  %v428_v31 = vunpack.c.2.s8 %v404_v21  ;;  %v431_v36 = vunpack.c.3.s8 %v405_v22 }
  0x21   : > { %530 = vmatpush.msra.mxu0 %v493_v24  ;;  %750 = vperm.xlu0 %1302, %v708_v29   ;;  %v425_v24 = vunpack.c.0.s8 %v405_v22 }
  0x22   : > { %595 = vmatpush.msra.mxu1 %v509_v25  ;;  %755 = vperm.xlu1 %1303, %v709_v40   ;;  %v456_v25 = vcvt.s32.f32 %v424_v23  ;;  %v407_v40 = vld [vmem:[%s1474_s20 + $0x38] sm:$0xff] }
  0x23   : > { %531 = vmatpush.msra.mxu0 %v492_v27  ;;  %v457_v26 = vcvt.s32.f32 %v425_v24  ;;  %v426_v27 = vunpack.c.1.s8 %v404_v21  ;;  %v435_v47 = vunpack.c.1.s8 %v407_v40  ;;  %v439_v0 = vunpack.c.3.s8 %v407_v40 }
  0x24   : > { %596 = vmatpush.msra.mxu1 %v508_v28  ;;  %745 = vperm.xlu2 %1304, %v707_v61   ;;  %v427_v28 = vunpack.c.1.s8 %v405_v22 }
  0x25   : > { %532 = vmatpush.msra.mxu0 %v491_v32  ;;  %v458_v29 = vcvt.s32.f32 %v426_v27  ;;  %v429_v32 = vunpack.c.2.s8 %v405_v22  ;;  %v471_v3 = vcvt.s32.f32 %v439_v0  ;;  %v823_v0 = vld [vmem:[%s1565_s22 + $0x48] sm:$0xff] }
  0x26   : > { %597 = vmatpush.msra.mxu1 %v507_v33  ;;  %v459_v30 = vcvt.s32.f32 %v427_v28  ;;  %v460_v33 = vcvt.s32.f32 %v428_v31  ;;  %v819_v28 = vld [vmem:[%s1565_s22 + $0x28] sm:$0xff] }
  0x27   : > { %533 = vmatpush.msra.mxu0 %v490_v34  ;;  %v461_v34 = vcvt.s32.f32 %v429_v32 }
  0x28   : > { %598 = vmatpush.msra.mxu1 %v506_v35  ;;  %v430_v35 = vunpack.c.3.s8 %v404_v21 }
  0x29   : > { %534 = vmatpush.msra.mxu0 %v489_v38  ;;  %765 = vperm.xlu0 %1302, %v711_v45   ;;  %v463_v38 = vcvt.s32.f32 %v431_v36 }
  0x2a   : > { %599 = vmatpush.msra.mxu1 %v505_v39  ;;  %770 = vperm.xlu1 %1303, %v712_v48   ;;  %v462_v37 = vcvt.s32.f32 %v430_v35  ;;  %v406_v39 = vld [vmem:[%s1474_s20 + $0x30] sm:$0xff] }
  0x2b   : > { %535 = vmatpush.msra.mxu0 %v488_v41  ;;  %v432_v41 = vunpack.c.0.s8 %v406_v39  ;;  %v434_v46 = vunpack.c.1.s8 %v406_v39  ;;  %v436_v54 = vunpack.c.2.s8 %v406_v39 }
  0x2c   : > { %600 = vmatpush.msra.mxu1 %v504_v42  ;;  %536 = vmatmul.f32.vlgmr.msra.gmra.mxu0 %v440_v43  ;;  %v433_v42 = vunpack.c.0.s8 %v407_v40  ;;  %v1331_v43 = vmov 0.0  }
  0x2d   : > { %601 = vmatmul.f32.vlgmr.msra.gmra.mxu1 %v441_v44  ;;  %760 = vperm.xlu2 %1304, %v710_v4   ;;  %384 = vst.msk [vmem:[#allocation2] sm:$0xff] %vm383_vm0, %v1331_v43  ;;  %v464_v44 = vcvt.s32.f32 %v432_v41  ;;  %v466_v48 = vcvt.s32.f32 %v434_v46  ;;  %v468_v61 = vcvt.s32.f32 %v436_v54  ;;  %v816_v4 = vld [vmem:[%s1565_s22 + $0x10] sm:$0xff]  ;;  %v821_v46 = vld [vmem:[%s1565_s22 + $0x38] sm:$0xff] }
  0x2e   : > { %385 = vst.msk [vmem:[#allocation2 + $0x8] sm:$0xff] %vm383_vm0, %v1331_v43  ;;  %v465_v45 = vcvt.s32.f32 %v433_v42 }
  0x2f   : > { %386 = vst.msk [vmem:[#allocation2 + $0x10] sm:$0xff] %vm383_vm0, %v1331_v43 }
  0x30   : > { %387 = vst.msk [vmem:[#allocation2 + $0x18] sm:$0xff] %vm383_vm0, %v1331_v43 }
  0x31   : > { %780 = vperm.xlu0 %1302, %v714_v51   ;;  %388 = vst.msk [vmem:[#allocation2 + $0x20] sm:$0xff] %vm383_vm0, %v1331_v43  ;;  %v833_v51 = vld [vmem:[%s1693_s4 + $0x18] sm:$0xff] }
  0x32   : > { %785 = vperm.xlu1 %1303, %v715_v55   ;;  %389 = vst.msk [vmem:[#allocation2 + $0x28] sm:$0xff] %vm383_vm0, %v1331_v43  ;;  %1011 = vmatpush.msra.mxu3 %v833_v51  ;;  %v437_v55 = vunpack.c.2.s8 %v407_v40 }
  0x33   : > { %390 = vst.msk [vmem:[#allocation2 + $0x30] sm:$0xff] %vm383_vm0, %v1331_v43 }
  0x34   : > { %539 = vmatmul.f32.gmra.mxu0 %v442_v49  ;;  %391 = vst.msk [vmem:[#allocation2 + $0x38] sm:$0xff] %vm383_vm0, %v1331_v43  ;;  %v467_v49 = vcvt.s32.f32 %v435_v47  ;;  %1012 = vmatpush.msra.mxu3 %v832_v53 }
  0x35   : > { %604 = vmatmul.f32.gmra.mxu1 %v443_v50  ;;  %775 = vperm.xlu2 %1304, %v713_v9   ;;  %392 = vst.msk [vmem:[#allocation2 + $0x40] sm:$0xff] %vm383_vm0, %v1331_v43  ;;  %v837_v50 = vld [vmem:[%s1694_s5 + $0x18] sm:$0xff]  ;;  %v473_v12 = vld [vmem:[#allocation2 + $0x8] sm:$0xff] }
  0x36   : > { %393 = vst.msk [vmem:[#allocation2 + $0x48] sm:$0xff] %vm383_vm0, %v1331_v43  ;;  %898 = vmatpush.msra.mxu2 %v837_v50  ;;  %v474_v21 = vld [vmem:[#allocation2 + $0x10] sm:$0xff] }
  0x37   : > { %394 = vst.msk [vmem:[#allocation2 + $0x50] sm:$0xff] %vm383_vm0, %v1331_v43 }
  0x38   : > { %395 = vst.msk [vmem:[#allocation2 + $0x58] sm:$0xff] %vm383_vm0, %v1331_v43  ;;  %899 = vmatpush.msra.mxu2 %v836_v52 }
  0x39   : > { %795 = vperm.xlu0 %1302, %v717_v58   ;;  %396 = vst.msk [vmem:[#allocation2 + $0x60] sm:$0xff] %vm383_vm0, %v1331_v43  ;;  %v834_v58 = vld [vmem:[%s1694_s5] sm:$0xff] }
  0x3a   : > { %397 = vst.msk [vmem:[#allocation2 + $0x68] sm:$0xff] %vm383_vm0, %v1331_v43 }
  0x3b   : > { %398 = vst.msk [vmem:[#allocation2 + $0x70] sm:$0xff] %vm383_vm0, %v1331_v43 }
  0x3c   : > { %542 = vmatmul.f32.gmra.mxu0 %v444_v56  ;;  %399 = vst.msk [vmem:[#allocation2 + $0x78] sm:$0xff] %vm383_vm0, %v1331_v43  ;;  %v835_v56 = vld [vmem:[%s1694_s5 + $0x8] sm:$0xff] }
  0x3d   : > { %607 = vmatmul.f32.gmra.mxu1 %v445_v57  ;;  %790 = vperm.xlu2 %1304, %v716_v14   ;;  %v831_v57 = vld [vmem:[%s1693_s4 + $0x8] sm:$0xff] }
  0x3e   : > { %900 = vmatpush.msra.mxu2 %v835_v56  ;;  %1013 = vmatpush.msra.mxu3 %v831_v57  ;;  %v478_v57 = vld [vmem:[#allocation2 + $0x30] sm:$0xff] }
  0x40   : > { %901 = vmatpush.msra.mxu2 %v834_v58  ;;  %1014 = vmatpush.msra.mxu3 %v830_v59 }
  0x41   : > { %1257 = vmatmul.msk.f32.vlgmr.msra.gmra.mxu3 %vm383_vm0, %v814_v60 }
  0x44   : > { %545 = vmatmul.f32.gmra.mxu0 %v446_v62  ;;  %v469_v62 = vcvt.s32.f32 %v437_v55  ;;  %v822_v55 = vld [vmem:[%s1565_s22 + $0x40] sm:$0xff] }
  0x45   : > { %610 = vmatmul.f32.gmra.mxu1 %v447_v63  ;;  %v438_v63 = vunpack.c.3.s8 %v406_v39  ;;  %v476_v39 = vld [vmem:[#allocation2 + $0x20] sm:$0xff] }
  0x47   : > { %v470_v2 = vcvt.s32.f32 %v438_v63 }
  0x49   : > { %1258 = vmatmul.msk.f32.gmra.mxu3 %vm383_vm0, %v815_v1 }
  0x4c   : > { %548 = vmatmul.f32.gmra.mxu0 %v448_v5 }
  0x4d   : > { %613 = vmatmul.f32.gmra.mxu1 %v449_v6  ;;  %v472_v6 = vld [vmem:[#allocation2] sm:$0xff] }
  0x51   : > { %1259 = vmatmul.msk.f32.gmra.mxu3 %vm383_vm0, %v816_v4 }
  0x54   : > { %551 = vmatmul.f32.gmra.mxu0 %v450_v10  ;;  %v817_v10 = vld [vmem:[%s1565_s22 + $0x18] sm:$0xff] }
  0x55   : > { %616 = vmatmul.f32.gmra.mxu1 %v451_v11 }
  0x59   : > { %1260 = vmatmul.msk.f32.gmra.mxu3 %vm383_vm0, %v817_v10 }
  0x5c   : > { %554 = vmatmul.f32.gmra.mxu0 %v452_v15 }
  0x5d   : > { %619 = vmatmul.f32.gmra.mxu1 %v453_v16 }
  0x64   : > { %557 = vmatmul.f32.gmra.mxu0 %v454_v19  ;;  %v818_v19 = vld [vmem:[%s1565_s22 + $0x20] sm:$0xff] }
  0x65   : > { %622 = vmatmul.f32.gmra.mxu1 %v455_v20  ;;  %1261 = vmatmul.msk.f32.gmra.mxu3 %vm383_vm0, %v818_v19 }
  0x6c   : > { %560 = vmatmul.f32.gmra.mxu0 %v456_v25 }
  0x6d   : > { %625 = vmatmul.f32.gmra.mxu1 %v457_v26  ;;  %1262 = vmatmul.msk.f32.gmra.mxu3 %vm383_vm0, %v819_v28 }
  0x74   : > { %563 = vmatmul.f32.gmra.mxu0 %v458_v29 }
  0x75   : > { %628 = vmatmul.f32.gmra.mxu1 %v459_v30  ;;  %v475_v30 = vld [vmem:[#allocation2 + $0x18] sm:$0xff] }
  0x76   : > { %v741_v51 = vpop.permute.xlu2 %740 }
  0x7c   : > { %566 = vmatmul.f32.gmra.mxu0 %v460_v33 }
  0x7d   : > { %631 = vmatmul.f32.gmra.mxu1 %v461_v34 }
  0x83   : > { %v721_v15 = vpop.permute.xlu0 %720 }
  0x84   : > { %569 = vmatmul.f32.gmra.mxu0 %v462_v37  ;;  %v731_v33 = vpop.permute.xlu1 %730  ;;  %v820_v37 = vld [vmem:[%s1565_s22 + $0x30] sm:$0xff] }
  0x85   : > { %634 = vmatmul.f32.gmra.mxu1 %v463_v38  ;;  %1263 = vmatmul.msk.f32.gmra.mxu3 %vm383_vm0, %v820_v37 }
  0x8b   : > { %v726_v25 = vpop.permute.xlu0 %725 }
  0x8c   : > { %572 = vmatmul.f32.gmra.mxu0 %v464_v44  ;;  %v736_v43 = vpop.permute.xlu1 %735 }
  0x8d   : > { %637 = vmatmul.f32.gmra.mxu1 %v465_v45  ;;  %1264 = vmatmul.msk.f32.gmra.mxu3 %vm383_vm0, %v821_v46 }
  0x94   : > { %575 = vmatmul.f32.gmra.mxu0 %v466_v48  ;;  %v477_v48 = vld [vmem:[#allocation2 + $0x28] sm:$0xff] }
  0x95   : > { %640 = vmatmul.f32.gmra.mxu1 %v467_v49  ;;  %1265 = vmatmul.msk.f32.gmra.mxu3 %vm383_vm0, %v822_v55 }
  0x9c   : > { %578 = vmatmul.f32.gmra.mxu0 %v468_v61  ;;  %v746_v61 = vpop.permute.xlu2 %745 }
  0x9d   : > { %643 = vmatmul.f32.gmra.mxu1 %v469_v62  ;;  %1266 = vmatmul.msk.f32.gmra.mxu3 %vm383_vm0, %v823_v0  ;;  %v486_v0 = vld [vmem:[#allocation2 + $0x70] sm:$0xff] }
  0xa4   : > { %581 = vmatmul.f32.gmra.mxu0 %v470_v2  ;;  %v479_v2 = vld [vmem:[#allocation2 + $0x38] sm:$0xff] }
  0xa5   : > { %646 = vmatmul.f32.gmra.mxu1 %v471_v3 }
  0xa9   : > { %v537_v5 = vpop.f32.mrf.mxu0 }
  0xaa   : > { %v602_v7 = vpop.f32.mrf.mxu1 }
  0xab   : > { %v603_v8 = vadd.f32 %v602_v7, %v537_v5 }
  0xad   : > { %v650_v9 = vadd.f32 %v603_v8, %v472_v6  ;;  %v751_v6 = vpop.permute.xlu0 %750 }
  0xaf   : > { %667 = vst.msk [vmem:[#allocation2] sm:$0xff] %vm383_vm0, %v650_v9  ;;  %v824_v9 = vld [vmem:[%s1565_s22 + $0x50] sm:$0xff] }
  0xb0   : > { %1267 = vmatmul.msk.f32.gmra.mxu3 %vm383_vm0, %v824_v9  ;;  %v487_v9 = vld [vmem:[#allocation2 + $0x78] sm:$0xff] }
  0xb1   : > { %v540_v11 = vpop.f32.mrf.mxu0 }
  0xb2   : > { %v605_v13 = vpop.f32.mrf.mxu1 }
  0xb3   : > { %v606_v14 = vadd.f32 %v605_v13, %v540_v11  ;;  %v480_v11 = vld [vmem:[#allocation2 + $0x40] sm:$0xff] }
  0xb5   : > { %v651_v16 = vadd.f32 %v606_v14, %v473_v12 }
  0xb6   : > { %v686_v17 = vld [vmem:[#allocation2] sm:$0xff] }
  0xb7   : > { %668 = vst.msk [vmem:[#allocation2 + $0x8] sm:$0xff] %vm383_vm0, %v651_v16  ;;  %v798_v18 = vmul.f32 %v721_v15, %v686_v17  ;;  %v756_v15 = vpop.permute.xlu1 %755 }
  0xb9   : > { %1241 = vmatmul.msk.f32.vlgmr.msra.gmra.mxu2 %vm383_vm0, %v798_v18  ;;  %v543_v20 = vpop.f32.mrf.mxu0  ;;  %v825_v18 = vld [vmem:[%s1565_s22 + $0x58] sm:$0xff] }
  0xba   : > { %v608_v22 = vpop.f32.mrf.mxu1  ;;  %1268 = vmatmul.msk.f32.gmra.mxu3 %vm383_vm0, %v825_v18 }
  0xbb   : > { %v609_v23 = vadd.f32 %v608_v22, %v543_v20  ;;  %v481_v20 = vld [vmem:[#allocation2 + $0x48] sm:$0xff] }
  0xbd   : > { %v652_v24 = vadd.f32 %v609_v23, %v474_v21 }
  0xbe   : > { %v687_v26 = vld [vmem:[#allocation2 + $0x8] sm:$0xff] }
  0xbf   : > { %669 = vst.msk [vmem:[#allocation2 + $0x10] sm:$0xff] %vm383_vm0, %v652_v24  ;;  %v799_v27 = vmul.f32 %v726_v25, %v687_v26  ;;  %v761_v24 = vpop.permute.xlu2 %760 }
  0xc1   : > { %1242 = vmatmul.msk.f32.gmra.mxu2 %vm383_vm0, %v799_v27  ;;  %v546_v29 = vpop.f32.mrf.mxu0  ;;  %v826_v27 = vld [vmem:[%s1565_s22 + $0x60] sm:$0xff] }
  0xc2   : > { %v611_v31 = vpop.f32.mrf.mxu1  ;;  %1269 = vmatmul.msk.f32.gmra.mxu3 %vm383_vm0, %v826_v27 }
  0xc3   : > { %v612_v32 = vadd.f32 %v611_v31, %v546_v29  ;;  %v482_v29 = vld [vmem:[#allocation2 + $0x50] sm:$0xff] }
  0xc5   : > { %v653_v34 = vadd.f32 %v612_v32, %v475_v30 }
  0xc6   : > { %v688_v35 = vld [vmem:[#allocation2 + $0x10] sm:$0xff] }
  0xc7   : > { %670 = vst.msk [vmem:[#allocation2 + $0x18] sm:$0xff] %vm383_vm0, %v653_v34  ;;  %v800_v36 = vmul.f32 %v731_v33, %v688_v35  ;;  %v766_v33 = vpop.permute.xlu0 %765 }
  0xc9   : > { %1243 = vmatmul.msk.f32.gmra.mxu2 %vm383_vm0, %v800_v36  ;;  %v549_v38 = vpop.f32.mrf.mxu0  ;;  %v827_v36 = vld [vmem:[%s1565_s22 + $0x68] sm:$0xff] }
  0xca   : > { %v614_v40 = vpop.f32.mrf.mxu1  ;;  %1270 = vmatmul.msk.f32.gmra.mxu3 %vm383_vm0, %v827_v36 }
  0xcb   : > { %v615_v41 = vadd.f32 %v614_v40, %v549_v38  ;;  %v483_v38 = vld [vmem:[#allocation2 + $0x58] sm:$0xff] }
  0xcd   : > { %v654_v42 = vadd.f32 %v615_v41, %v476_v39 }
  0xce   : > { %v689_v44 = vld [vmem:[#allocation2 + $0x18] sm:$0xff] }
  0xcf   : > { %671 = vst.msk [vmem:[#allocation2 + $0x20] sm:$0xff] %vm383_vm0, %v654_v42  ;;  %v801_v45 = vmul.f32 %v736_v43, %v689_v44  ;;  %v771_v42 = vpop.permute.xlu1 %770 }
  0xd1   : > { %1244 = vmatmul.msk.f32.gmra.mxu2 %vm383_vm0, %v801_v45  ;;  %v552_v47 = vpop.f32.mrf.mxu0  ;;  %v828_v45 = vld [vmem:[%s1565_s22 + $0x70] sm:$0xff] }
  0xd2   : > { %v617_v49 = vpop.f32.mrf.mxu1  ;;  %1271 = vmatmul.msk.f32.gmra.mxu3 %vm383_vm0, %v828_v45 }
  0xd3   : > { %v618_v50 = vadd.f32 %v617_v49, %v552_v47  ;;  %v484_v47 = vld [vmem:[#allocation2 + $0x60] sm:$0xff] }
  0xd5   : > { %v655_v52 = vadd.f32 %v618_v50, %v477_v48 }
  0xd6   : > { %v690_v53 = vld [vmem:[#allocation2 + $0x20] sm:$0xff] }
  0xd7   : > { %672 = vst.msk [vmem:[#allocation2 + $0x28] sm:$0xff] %vm383_vm0, %v655_v52  ;;  %v802_v54 = vmul.f32 %v741_v51, %v690_v53  ;;  %v776_v51 = vpop.permute.xlu2 %775 }
  0xd9   : > { %1245 = vmatmul.msk.f32.gmra.mxu2 %vm383_vm0, %v802_v54  ;;  %v555_v56 = vpop.f32.mrf.mxu0  ;;  %v829_v54 = vld [vmem:[%s1565_s22 + $0x78] sm:$0xff] }
  0xda   : > { %v620_v58 = vpop.f32.mrf.mxu1  ;;  %1272 = vmatmul.msk.f32.gmra.mxu3 %vm383_vm0, %v829_v54 }
  0xdb   : > { %v621_v59 = vadd.f32 %v620_v58, %v555_v56  ;;  %v485_v56 = vld [vmem:[#allocation2 + $0x68] sm:$0xff] }
  0xdd   : > { %v656_v60 = vadd.f32 %v621_v59, %v478_v57 }
  0xde   : > { %v691_v62 = vld [vmem:[#allocation2 + $0x28] sm:$0xff] }
  0xdf   : > { %673 = vst.msk [vmem:[#allocation2 + $0x30] sm:$0xff] %vm383_vm0, %v656_v60  ;;  %v803_v63 = vmul.f32 %v746_v61, %v691_v62  ;;  %v781_v60 = vpop.permute.xlu0 %780 }
  0xe1   : > { %1246 = vmatmul.msk.f32.gmra.mxu2 %vm383_vm0, %v803_v63  ;;  %v558_v1 = vpop.f32.mrf.mxu0 }
  0xe2   : > { %v623_v3 = vpop.f32.mrf.mxu1 }
  0xe3   : > { %v624_v4 = vadd.f32 %v623_v3, %v558_v1  ;;  %v1016_v3 = vpop.f32.mrf.mxu3 }
  0xe5   : > { %v657_v5 = vadd.f32 %v624_v4, %v479_v2 }
  0xe6   : > { %v692_v7 = vld [vmem:[#allocation2 + $0x30] sm:$0xff] }
  0xe7   : > { %674 = vst.msk [vmem:[#allocation2 + $0x38] sm:$0xff] %vm383_vm0, %v657_v5  ;;  %v804_v8 = vmul.f32 %v751_v6, %v692_v7  ;;  %v786_v5 = vpop.permute.xlu1 %785 }
  0xe9   : > { %1247 = vmatmul.msk.f32.gmra.mxu2 %vm383_vm0, %v804_v8  ;;  %v561_v10 = vpop.f32.mrf.mxu0 }
  0xea   : > { %v626_v12 = vpop.f32.mrf.mxu1 }
  0xeb   : > { %v627_v13 = vadd.f32 %v626_v12, %v561_v10 }
  0xed   : > { %v658_v14 = vadd.f32 %v627_v13, %v480_v11  ;;  %v791_v13 = vpop.permute.xlu2 %790 }
  0xee   : > { %v693_v16 = vld [vmem:[#allocation2 + $0x38] sm:$0xff] }
  0xef   : > { %675 = vst.msk [vmem:[#allocation2 + $0x40] sm:$0xff] %vm383_vm0, %v658_v14  ;;  %v805_v17 = vmul.f32 %v756_v15, %v693_v16  ;;  %v1019_v15 = vpop.f32.mrf.mxu3 }
  0xf1   : > { %1248 = vmatmul.msk.f32.gmra.mxu2 %vm383_vm0, %v805_v17  ;;  %v564_v19 = vpop.f32.mrf.mxu0  ;;  %v796_v17 = vpop.permute.xlu0 %795 }
  0xf2   : > { %v629_v21 = vpop.f32.mrf.mxu1 }
  0xf3   : > { %v630_v22 = vadd.f32 %v629_v21, %v564_v19 }
  0xf5   : > { %v659_v23 = vadd.f32 %v630_v22, %v481_v20  ;;  %v1640_v22 = vld [vmem:[%s1695_s6] ss:$0 sm:$0xff] }
  0xf6   : > { %v694_v25 = vld [vmem:[#allocation2 + $0x40] sm:$0xff] }
  0xf7   : > { %676 = vst.msk [vmem:[#allocation2 + $0x48] sm:$0xff] %vm383_vm0, %v659_v23  ;;  %v806_v26 = vmul.f32 %v761_v24, %v694_v25  ;;  %v1022_v20 = vpop.f32.mrf.mxu3 }
  0xf9   : > { %1249 = vmatmul.msk.f32.gmra.mxu2 %vm383_vm0, %v806_v26  ;;  %v567_v28 = vpop.f32.mrf.mxu0 }
  0xfa   : > { %v632_v30 = vpop.f32.mrf.mxu1 }
  0xfb   : > { %v633_v31 = vadd.f32 %v632_v30, %v567_v28 }
  0xfd   : > { %v660_v32 = vadd.f32 %v633_v31, %v482_v29 }
  0xfe   : > { %v695_v34 = vld [vmem:[#allocation2 + $0x48] sm:$0xff] }
  0xff   : > { %677 = vst.msk [vmem:[#allocation2 + $0x50] sm:$0xff] %vm383_vm0, %v660_v32  ;;  %v807_v35 = vmul.f32 %v766_v33, %v695_v34  ;;  %v1025_v21 = vpop.f32.mrf.mxu3 }
 0x101   : > { %1250 = vmatmul.msk.f32.gmra.mxu2 %vm383_vm0, %v807_v35  ;;  %v570_v37 = vpop.f32.mrf.mxu0 }
 0x102   : > { %v635_v39 = vpop.f32.mrf.mxu1 }
 0x103   : > { %v636_v40 = vadd.f32 %v635_v39, %v570_v37 }
 0x105   : > { %v661_v41 = vadd.f32 %v636_v40, %v483_v38 }
 0x106   : > { %v696_v43 = vld [vmem:[#allocation2 + $0x50] sm:$0xff] }
 0x107   : > { %678 = vst.msk [vmem:[#allocation2 + $0x58] sm:$0xff] %vm383_vm0, %v661_v41  ;;  %v808_v44 = vmul.f32 %v771_v42, %v696_v43  ;;  %v1028_v28 = vpop.f32.mrf.mxu3 }
 0x109   : > { %1251 = vmatmul.msk.f32.gmra.mxu2 %vm383_vm0, %v808_v44  ;;  %v573_v46 = vpop.f32.mrf.mxu0 }
 0x10a   : > { %v638_v48 = vpop.f32.mrf.mxu1 }
 0x10b   : > { %v639_v49 = vadd.f32 %v638_v48, %v573_v46 }
 0x10d   : > { %v662_v50 = vadd.f32 %v639_v49, %v484_v47 }
 0x10e   : > { %v697_v52 = vld [vmem:[#allocation2 + $0x58] sm:$0xff] }
 0x10f   : > { %679 = vst.msk [vmem:[#allocation2 + $0x60] sm:$0xff] %vm383_vm0, %v662_v50  ;;  %v809_v53 = vmul.f32 %v776_v51, %v697_v52  ;;  %v1031_v34 = vpop.f32.mrf.mxu3 }
 0x111   : > { %1252 = vmatmul.msk.f32.gmra.mxu2 %vm383_vm0, %v809_v53  ;;  %v576_v55 = vpop.f32.mrf.mxu0 }
 0x112   : > { %v641_v57 = vpop.f32.mrf.mxu1 }
 0x113   : > { %v642_v58 = vadd.f32 %v641_v57, %v576_v55 }
 0x115   : > { %v663_v59 = vadd.f32 %v642_v58, %v485_v56 }
 0x116   : > { %v698_v61 = vld [vmem:[#allocation2 + $0x60] sm:$0xff] }
 0x117   : > { %680 = vst.msk [vmem:[#allocation2 + $0x68] sm:$0xff] %vm383_vm0, %v663_v59  ;;  %v810_v62 = vmul.f32 %v781_v60, %v698_v61  ;;  %v1034_v40 = vpop.f32.mrf.mxu3 }
 0x119   : > { %1253 = vmatmul.msk.f32.gmra.mxu2 %vm383_vm0, %v810_v62  ;;  %v579_v63 = vpop.f32.mrf.mxu0 }
 0x11a   : > { %v644_v1 = vpop.f32.mrf.mxu1 }
 0x11b   : > { %v645_v2 = vadd.f32 %v644_v1, %v579_v63 }
 0x11d   : > { %v664_v4 = vadd.f32 %v645_v2, %v486_v0 }
 0x11e   : > { %v699_v6 = vld [vmem:[#allocation2 + $0x68] sm:$0xff] }
 0x11f   : > { %681 = vst.msk [vmem:[#allocation2 + $0x70] sm:$0xff] %vm383_vm0, %v664_v4  ;;  %v811_v7 = vmul.f32 %v786_v5, %v699_v6  ;;  %v1037_v46 = vpop.f32.mrf.mxu3 }
 0x121   : > { %1254 = vmatmul.msk.f32.gmra.mxu2 %vm383_vm0, %v811_v7  ;;  %v582_v8 = vpop.f32.mrf.mxu0 }
 0x122   : > { %v647_v10 = vpop.f32.mrf.mxu1 }
 0x123   : > { %v648_v11 = vadd.f32 %v647_v10, %v582_v8 }
 0x125   : > { %v665_v12 = vadd.f32 %v648_v11, %v487_v9 }
 0x126   : > { %v700_v14 = vld [vmem:[#allocation2 + $0x70] sm:$0xff] }
 0x127   : > { %682 = vst.msk [vmem:[#allocation2 + $0x78] sm:$0xff] %vm383_vm0, %v665_v12  ;;  %v812_v16 = vmul.f32 %v791_v13, %v700_v14  ;;  %v1040_v52 = vpop.f32.mrf.mxu3 }
 0x129   : > { %1255 = vmatmul.msk.f32.gmra.mxu2 %vm383_vm0, %v812_v16 }
 0x12e   : > { %v701_v18 = vld [vmem:[#allocation2 + $0x78] sm:$0xff] }
 0x12f   : > { %v813_v19 = vmul.f32 %v796_v17, %v701_v18  ;;  %v1043_v58 = vpop.f32.mrf.mxu3 }
 0x131   : > { %1256 = vmatmul.msk.f32.gmra.mxu2 %vm383_vm0, %v813_v19 }
 0x137   : > { %v1046_v0 = vpop.f32.mrf.mxu3 }
 0x13c   : > { %v903_v23 = vpop.f32.mrf.mxu2 }
 0x13d   : > { %v1017_v24 = vadd.f32 %v1016_v3, %v903_v23 }
 0x13f   : > { %v1068_v25 = vadd.f32 %v1640_v22, %v1017_v24  ;;  %v1049_v6 = vpop.f32.mrf.mxu3 }
 0x141   : > { %v1084_v26 = vmax.f32 %v1068_v25, 0.0 }
 0x143   : > { %1100 = vst [vmem:[%s1647_s9] sm:$0xff] %v1084_v26 }
 0x144   : > { %v906_v27 = vpop.f32.mrf.mxu2 }
 0x145   : > { %v1020_v29 = vadd.f32 %v1019_v15, %v906_v27 }
 0x147   : > { %v1069_v30 = vadd.f32 %v1640_v22, %v1020_v29  ;;  %v1052_v12 = vpop.f32.mrf.mxu3 }
 0x149   : > { %v1085_v31 = vmax.f32 %v1069_v30, 0.0 }
 0x14b   : > { %1101 = vst [vmem:[%s1647_s9 + $0x8] sm:$0xff] %v1085_v31 }
 0x14c   : > { %v909_v32 = vpop.f32.mrf.mxu2 }
 0x14d   : > { %v1023_v33 = vadd.f32 %v1022_v20, %v909_v32 }
 0x14f   : > { %v1070_v35 = vadd.f32 %v1640_v22, %v1023_v33  ;;  %v1055_v18 = vpop.f32.mrf.mxu3 }
 0x151   : > { %v1086_v36 = vmax.f32 %v1070_v35, 0.0 }
 0x153   : > { %1102 = vst [vmem:[%s1647_s9 + $0x10] sm:$0xff] %v1086_v36 }
 0x154   : > { %v912_v37 = vpop.f32.mrf.mxu2 }
 0x155   : > { %v1026_v38 = vadd.f32 %v1025_v21, %v912_v37 }
 0x157   : > { %v1071_v39 = vadd.f32 %v1640_v22, %v1026_v38  ;;  %v1058_v25 = vpop.f32.mrf.mxu3 }
 0x159   : > { %v1087_v41 = vmax.f32 %v1071_v39, 0.0 }
 0x15b   : > { %1103 = vst [vmem:[%s1647_s9 + $0x18] sm:$0xff] %v1087_v41 }
 0x15c   : > { %v915_v42 = vpop.f32.mrf.mxu2 }
 0x15d   : > { %v1029_v43 = vadd.f32 %v1028_v28, %v915_v42 }
 0x15f   : > { %v1072_v44 = vadd.f32 %v1640_v22, %v1029_v43  ;;  %v1061_v31 = vpop.f32.mrf.mxu3 }
 0x161   : > { %v1088_v45 = vmax.f32 %v1072_v44, 0.0 }
 0x163   : > { %1104 = vst [vmem:[%s1647_s9 + $0x20] sm:$0xff] %v1088_v45 }
 0x164   : > { %v918_v47 = vpop.f32.mrf.mxu2 }
 0x165   : > { %v1032_v48 = vadd.f32 %v1031_v34, %v918_v47 }
 0x167   : > { %v1073_v49 = vadd.f32 %v1640_v22, %v1032_v48 }
 0x169   : > { %v1089_v50 = vmax.f32 %v1073_v49, 0.0 }
 0x16b   : > { %1105 = vst [vmem:[%s1647_s9 + $0x28] sm:$0xff] %v1089_v50 }
 0x16c   : > { %v921_v51 = vpop.f32.mrf.mxu2 }
 0x16d   : > { %v1035_v53 = vadd.f32 %v1034_v40, %v921_v51 }
 0x16f   : > { %v1074_v54 = vadd.f32 %v1640_v22, %v1035_v53 }
 0x171   : > { %v1090_v55 = vmax.f32 %v1074_v54, 0.0 }
 0x173   : > { %1106 = vst [vmem:[%s1647_s9 + $0x30] sm:$0xff] %v1090_v55 }
 0x174   : > { %v924_v56 = vpop.f32.mrf.mxu2 }
 0x175   : > { %v1038_v57 = vadd.f32 %v1037_v46, %v924_v56 }
 0x177   : > { %v1075_v59 = vadd.f32 %v1640_v22, %v1038_v57 }
 0x179   : > { %v1091_v60 = vmax.f32 %v1075_v59, 0.0 }
 0x17b   : > { %1107 = vst [vmem:[%s1647_s9 + $0x38] sm:$0xff] %v1091_v60 }
 0x17c   : > { %v927_v61 = vpop.f32.mrf.mxu2 }
 0x17d   : > { %v1041_v62 = vadd.f32 %v1040_v52, %v927_v61 }
 0x17f   : > { %v1076_v63 = vadd.f32 %v1640_v22, %v1041_v62 }
 0x181   : > { %v1092_v1 = vmax.f32 %v1076_v63, 0.0 }
 0x183   : > { %1108 = vst [vmem:[%s1647_s9 + $0x40] sm:$0xff] %v1092_v1 }
 0x184   : > { %v930_v2 = vpop.f32.mrf.mxu2 }
 0x185   : > { %v1044_v3 = vadd.f32 %v1043_v58, %v930_v2 }
 0x187   : > { %v1077_v4 = vadd.f32 %v1640_v22, %v1044_v3 }
 0x189   : > { %v1093_v5 = vmax.f32 %v1077_v4, 0.0 }
 0x18b   : > { %1109 = vst [vmem:[%s1647_s9 + $0x48] sm:$0xff] %v1093_v5 }
 0x18c   : > { %v933_v7 = vpop.f32.mrf.mxu2 }
 0x18d   : > { %v1047_v8 = vadd.f32 %v1046_v0, %v933_v7 }
 0x18f   : > { %v1078_v9 = vadd.f32 %v1640_v22, %v1047_v8 }
 0x191   : > { %v1094_v10 = vmax.f32 %v1078_v9, 0.0 }
 0x193   : > { %1110 = vst [vmem:[%s1647_s9 + $0x50] sm:$0xff] %v1094_v10 }
 0x194   : > { %v936_v11 = vpop.f32.mrf.mxu2 }
 0x195   : > { %v1050_v13 = vadd.f32 %v1049_v6, %v936_v11 }
 0x197   : > { %v1079_v14 = vadd.f32 %v1640_v22, %v1050_v13 }
 0x199   : > { %v1095_v15 = vmax.f32 %v1079_v14, 0.0 }
 0x19b   : > { %1111 = vst [vmem:[%s1647_s9 + $0x58] sm:$0xff] %v1095_v15 }
 0x19c   : > { %v939_v16 = vpop.f32.mrf.mxu2 }
 0x19d   : > { %v1053_v17 = vadd.f32 %v1052_v12, %v939_v16 }
 0x19f   : > { %v1080_v19 = vadd.f32 %v1640_v22, %v1053_v17 }
 0x1a1   : > { %v1096_v20 = vmax.f32 %v1080_v19, 0.0 }
 0x1a3   : > { %1112 = vst [vmem:[%s1647_s9 + $0x60] sm:$0xff] %v1096_v20 }
 0x1a4   : > { %v942_v21 = vpop.f32.mrf.mxu2 }
 0x1a5   : > { %v1056_v23 = vadd.f32 %v1055_v18, %v942_v21 }
 0x1a7   : > { %v1081_v24 = vadd.f32 %v1640_v22, %v1056_v23 }
 0x1a9   : > { %v1097_v26 = vmax.f32 %v1081_v24, 0.0 }
 0x1ab   : > { %1113 = vst [vmem:[%s1647_s9 + $0x68] sm:$0xff] %v1097_v26 }
 0x1ac   : > { %v945_v27 = vpop.f32.mrf.mxu2 }
 0x1ad   : > { %v1059_v28 = vadd.f32 %v1058_v25, %v945_v27 }
 0x1af   : > { %v1082_v29 = vadd.f32 %v1640_v22, %v1059_v28 }
 0x1b1   : > { %v1098_v30 = vmax.f32 %v1082_v29, 0.0 }
 0x1b3   : > { %1114 = vst [vmem:[%s1647_s9 + $0x70] sm:$0xff] %v1098_v30 }
 0x1b4   : > { %v948_v32 = vpop.f32.mrf.mxu2 }
 0x1b5   : > { %v1062_v33 = vadd.f32 %v1061_v31, %v948_v32 }
 0x1b7   : > { %v1083_v34 = vadd.f32 %v1640_v22, %v1062_v33 }
 0x1b9   : > { %v1099_v35 = vmax.f32 %v1083_v34, 0.0 }
 0x1bb   : > { %1115 = vst [vmem:[%s1647_s9 + $0x78] sm:$0xff] %v1099_v35 }
 0x1bc PF: > { %s17_s26 = sadd.s32 1, %s1328_s26   ;;  %s1697_s24 = smov %s1324_s25 }
 0x1bd   : > { %p14_p6 = scmp.ge.s32.totalorder %s17_s26, 4   ;;  %s1698_s25 = smov %s1700_s27 }
 0x1bf   :  { %16 = sbr.rel (!%p14_p6) target bundleno = 2 (0x2), region = 95 }

</bundles_post_ra>
